<compile_context>
chip_gen: v7x
topology: tpu7x:2x2x1
jax: 0.10.0
libtpu: 0.0.40
codegen_flags: <defaults>
</compile_context>

<pallas_src>
import functools

import jax
import jax.numpy as jnp
import numpy as np
from jax.experimental import pallas as pl
from jax.experimental.pallas import tpu as pltpu

LANE = 128                     # pad every channel dimension up to 128 lanes
X_RESIDENT_BYTES = 4 << 20     # keep X resident in VMEM if it fits this budget


def _round_up(n, m):
    return ((n + m - 1) // m) * m


def _pick_tile(n, candidates):
    for t in candidates:
        if n % t == 0:
            return t
    return LANE


# --------------------------------------------------------------------------
# Pallas kernel: one GCNConv layer, row-tiled with K-reduction over adj cols.
# --------------------------------------------------------------------------
def _gcn_layer_kernel(adj_ref, x_ref, w_ref, b_ref, out_ref, acc_ref, *,
                      apply_relu, x_resident, tk):
    k = pl.program_id(1)

    @pl.when(k == 0)
    def _():
        acc_ref[...] = jnp.zeros_like(acc_ref)

    if x_resident:
        # X lives fully in VMEM; grab the K-slice for this reduction step.
        off = pl.multiple_of(k * tk, tk)
        x_tile = x_ref[pl.ds(off, tk), :]
    else:
        x_tile = x_ref[...]

    # (TM, TK)bf16 @ (TK, Cin)bf16 on the MXU, accumulated in f32 scratch.
    acc_ref[...] += jnp.dot(adj_ref[...], x_tile,
                            preferred_element_type=jnp.float32)

    @pl.when(k == pl.num_programs(1) - 1)
    def _():
        # (A_hat @ X) @ W + b  (associativity of GCNConv's X@W-then-propagate)
        h = jnp.dot(acc_ref[...].astype(jnp.bfloat16), w_ref[...],
                    preferred_element_type=jnp.float32) + b_ref[...]
        if apply_relu:
            h = jnp.maximum(h, 0.0)
        out_ref[...] = h.astype(out_ref.dtype)


def gcn_layer(adj_bf16, x_bf16, w_bf16, b_f32, *, apply_relu, out_dtype):
    n = adj_bf16.shape[0]
    cin = x_bf16.shape[1]
    cout = w_bf16.shape[1]

    tm = _pick_tile(n, (256, 128))
    tk = _pick_tile(n, (1024, 512, 256, 128))
    grid = (n // tm, n // tk)

    x_resident = (n * cin * x_bf16.dtype.itemsize) <= X_RESIDENT_BYTES
    if x_resident:
        x_spec = pl.BlockSpec((n, cin), lambda i, k: (0, 0))      # fetched once
    else:
        x_spec = pl.BlockSpec((tk, cin), lambda i, k: (k, 0))     # streamed per K

    return pl.pallas_call(
        functools.partial(_gcn_layer_kernel, apply_relu=apply_relu,
                          x_resident=x_resident, tk=tk),
        out_shape=jax.ShapeDtypeStruct((n, cout), out_dtype),
        grid_spec=pltpu.PrefetchScalarGridSpec(
            num_scalar_prefetch=0,
            grid=grid,
            in_specs=[
                pl.BlockSpec((tm, tk), lambda i, k: (i, k)),      # adj tile
                x_spec,                                           # node features
                pl.BlockSpec((cin, cout), lambda i, k: (0, 0)),   # W (resident)
                pl.BlockSpec((1, cout), lambda i, k: (0, 0)),     # bias
            ],
            out_specs=pl.BlockSpec((tm, cout), lambda i, k: (i, 0)),
            scratch_shapes=[pltpu.VMEM((tm, cin), jnp.float32)],
        ),
        compiler_params=pltpu.CompilerParams(
            dimension_semantics=("parallel", "arbitrary"),
            vmem_limit_bytes=48 * 1024 * 1024,
        ),
    )(adj_bf16, x_bf16, w_bf16, b_f32)


# --------------------------------------------------------------------------
# Forward wrapper (glue: adjacency build, padding, layer chaining). Jitted.
# --------------------------------------------------------------------------
@functools.partial(jax.jit, static_argnames=("label_dim",))
def gcn_forward(x, edge_index, params, *, label_dim):
    """Semantics of GCN.forward(x, edge_index) with module defaults."""
    n = x.shape[0]
    f_in = x.shape[1]
    n_pad = _round_up(n, LANE)

    # Dense GCN-normalized adjacency with self loops: A_hat = D^-1/2 (A+I) D^-1/2
    # (row = target, col = source, matching PyG's source->target aggregation).
    adj = jnp.zeros((n, n), jnp.float32)
    adj = adj.at[edge_index[1], edge_index[0]].set(1.0)
    adj = adj + jnp.eye(n, dtype=jnp.float32)
    dinv = jax.lax.rsqrt(jnp.sum(adj, axis=1))
    adj = adj * dinv[:, None] * dinv[None, :]
    adj_bf = jnp.zeros((n_pad, n_pad), jnp.bfloat16).at[:n, :n].set(
        adj.astype(jnp.bfloat16))

    # Zero-pad node features to 128 lanes / padded node count.
    fp = params["w0"].shape[0]
    x_pad = jnp.zeros((n_pad, fp), jnp.bfloat16).at[:n, :f_in].set(
        x.astype(jnp.bfloat16))

    # self.convs -> relu
    h = gcn_layer(adj_bf, x_pad, params["w0"], params["b0"],
                  apply_relu=True, out_dtype=jnp.bfloat16)
    # self.conv_between -> relu (empty for conv_layers=2)
    for w_i, b_i in params["between"]:
        h = gcn_layer(adj_bf, h, w_i, b_i,
                      apply_relu=True, out_dtype=jnp.bfloat16)
    # self.conve (no relu); f32 lane-dense (N_pad, 128) output slab
    out = gcn_layer(adj_bf, h, params["w1"], params["b1"],
                    apply_relu=False, out_dtype=jnp.float32)
    # output_activation = identity (module default); slice real rows / labels
    return out[:n, :label_dim]


# --------------------------------------------------------------------------
# Pure-JAX reference (same math, same bf16 operand casts) for checking.
# --------------------------------------------------------------------------
def _reference(adj_bf, x_bf, params):
    f32 = jnp.float32

    def layer(a, xx, w, b, relu):
        ax = jnp.dot(a, xx, preferred_element_type=f32)
        h = jnp.dot(ax.astype(jnp.bfloat16), w, preferred_element_type=f32) + b
        return jnp.maximum(h, 0.0) if relu else h

    h = layer(adj_bf, x_bf, params["w0"], params["b0"], True).astype(jnp.bfloat16)
    for w_i, b_i in params["between"]:
        h = layer(adj_bf, h, w_i, b_i, True).astype(jnp.bfloat16)
    return layer(adj_bf, h, params["w1"], params["b1"], False)


# --------------------------------------------------------------------------
# Deterministic, lane-padded parameter initialization.
# --------------------------------------------------------------------------
def init_params(key, *, num_node_features, conv_dim, label_dim, conv_layers=2):
    fp = _round_up(num_node_features, LANE)
    hp = _round_up(conv_dim, LANE)
    lp = _round_up(label_dim, LANE)
    ks = jax.random.split(key, 2 * conv_layers)

    def pw(k, fi, fo, pi, po):  # zero-padded bf16 weight
        w = jax.random.normal(k, (fi, fo), jnp.float32) / np.sqrt(fi)
        return jnp.zeros((pi, po), jnp.float32).at[:fi, :fo].set(w).astype(
            jnp.bfloat16)

    def pb(k, fo, po):          # zero-padded f32 bias
        b = 0.1 * jax.random.normal(k, (fo,), jnp.float32)
        return jnp.zeros((1, po), jnp.float32).at[0, :fo].set(b)

    between = []
    for i in range(conv_layers - 2):
        between.append((pw(ks[2 + 2 * i], conv_dim, conv_dim, hp, hp),
                        pb(ks[3 + 2 * i], conv_dim, hp)))
    last = 2 * (conv_layers - 1)
    return {
        "w0": pw(ks[0], num_node_features, conv_dim, fp, hp),
        "b0": pb(ks[1], conv_dim, hp),
        "between": tuple(between),
        "w1": pw(ks[last], conv_dim, label_dim, hp, lp),
        "b1": pb(ks[last + 1], label_dim, lp),
    }


if __name__ == "__main__":
    key = jax.random.PRNGKey(0)
    k_x, k_p = jax.random.split(key)

    # Small but tile-able example: N=256 nodes, num_node_features=4,
    # conv_dim=16 (module default), label_dimension=2.
    N, F_IN, CONV_DIM, LABEL_DIM = 256, 4, 16, 2

    x = jax.random.normal(k_x, (N, F_IN), jnp.float32)

    # ring graph over all N nodes, both edge directions
    src = jnp.arange(N, dtype=jnp.int32)
    dst = (src + 1) % N
    edge_index = jnp.concatenate(
        [jnp.stack([src, dst]), jnp.stack([dst, src])], axis=1)  # (2, 2N)

    params = init_params(k_p, num_node_features=F_IN, conv_dim=CONV_DIM,
                         label_dim=LABEL_DIM)

    q = gcn_forward(x, edge_index, params, label_dim=LABEL_DIM)
    q = jax.block_until_ready(q)
    assert q.shape == (N, LABEL_DIM)

    # sanity check against pure-JAX reference of the same math
    adj = jnp.zeros((N, N), jnp.float32).at[edge_index[1], edge_index[0]].set(1.0)
    adj = adj + jnp.eye(N, dtype=jnp.float32)
    dinv = jax.lax.rsqrt(jnp.sum(adj, axis=1))
    adj_bf = (adj * dinv[:, None] * dinv[None, :]).astype(jnp.bfloat16)
    x_bf = jnp.zeros((N, params["w0"].shape[0]), jnp.bfloat16).at[:, :F_IN].set(
        x.astype(jnp.bfloat16))
    q_ref = _reference(adj_bf, x_bf, params)[:, :LABEL_DIM]
    np.testing.assert_allclose(np.asarray(q), np.asarray(q_ref),
                               rtol=2e-2, atol=2e-3)

    print("KERNEL_OK")
</pallas_src>

<mosaic_0001>
module attributes {stable_mosaic.version = 11 : i64} {
  func.func @_gcn_layer_kernel(%arg0: i32, %arg1: i32, %arg2: memref<256x256xbf16, #tpu.memory_space<vmem>>, %arg3: memref<256x128xbf16, #tpu.memory_space<vmem>>, %arg4: memref<128x128xbf16, #tpu.memory_space<vmem>>, %arg5: memref<1x128xf32, #tpu.memory_space<vmem>>, %arg6: memref<256x128xbf16, #tpu.memory_space<vmem>>, %arg7: memref<256x128xf32, #tpu.memory_space<vmem>>) attributes {dimension_semantics = [#tpu.dimension_semantics<parallel>, #tpu.dimension_semantics<arbitrary>], iteration_bounds = array<i64: 1, 1>, scalar_prefetch = 0 : i64, scratch_operands = 1 : i64, tpu.core_type = #tpu.core_type<tc>, window_params = [{transform_indices = @transform_0, window_bounds = array<i64: 256, 256>}, {pipeline_mode = #tpu.pipeline_mode<synchronous>, transform_indices = @transform_1, window_bounds = array<i64: 256, 128>}, {pipeline_mode = #tpu.pipeline_mode<synchronous>, transform_indices = @transform_2, window_bounds = array<i64: 128, 128>}, {pipeline_mode = #tpu.pipeline_mode<synchronous>, transform_indices = @transform_3, window_bounds = array<i64: 1, 128>}, {transform_indices = @transform_4, window_bounds = array<i64: 256, 128>}]} {
    %c0_i32 = arith.constant 0 : i32
    %0 = arith.cmpi eq, %arg1, %c0_i32 : i32
    %1 = arith.extui %0 : i1 to i32
    %c0_i32_0 = arith.constant 0 : i32
    %2 = arith.cmpi ne, %1, %c0_i32_0 : i32
    scf.if %2 {
      %cst_9 = arith.constant 0.000000e+00 : f32
      %15 = vector.broadcast %cst_9 : f32 to vector<256x128xf32>
      %c0_10 = arith.constant 0 : index
      %c0_11 = arith.constant 0 : index
      %16 = vector.load %arg7[%c0_10, %c0_11] : memref<256x128xf32, #tpu.memory_space<vmem>>, vector<256x128xf32>
      tpu.vector_store %arg7[%c0_10, %c0_11], %15 {strides = array<i32>} : memref<256x128xf32, #tpu.memory_space<vmem>>, vector<256x128xf32>,
    } else {
    }
    %c256_i32 = arith.constant 256 : i32
    %3 = arith.muli %arg1, %c256_i32 : i32
    %4 = tpu.assume_multiple %3, 256 : i32
    %5 = arith.index_cast %4 : i32 to index
    %c0 = arith.constant 0 : index
    %6 = vector.load %arg3[%5, %c0] : memref<256x128xbf16, #tpu.memory_space<vmem>>, vector<256x128xbf16>
    %c0_1 = arith.constant 0 : index
    %c0_2 = arith.constant 0 : index
    %7 = vector.load %arg7[%c0_1, %c0_2] : memref<256x128xf32, #tpu.memory_space<vmem>>, vector<256x128xf32>
    %c0_3 = arith.constant 0 : index
    %c0_4 = arith.constant 0 : index
    %8 = vector.load %arg2[%c0_3, %c0_4] : memref<256x256xbf16, #tpu.memory_space<vmem>>, vector<256x256xbf16>
    %cst = arith.constant dense<0.000000e+00> : vector<256x128xf32>
    %9 = tpu.matmul %8, %6, %cst {dimension_numbers = #tpu.dot_dimension_numbers<[1], [0], [0], [1], [0, 0, 1, 1], [], []>} : vector<256x256xbf16>, vector<256x128xbf16>, vector<256x128xf32> -> vector<256x128xf32>
    %10 = arith.addf %7, %9 : vector<256x128xf32>
    %c0_5 = arith.constant 0 : index
    %c0_6 = arith.constant 0 : index
    %11 = vector.load %arg7[%c0_5, %c0_6] : memref<256x128xf32, #tpu.memory_space<vmem>>, vector<256x128xf32>
    tpu.vector_store %arg7[%c0_5, %c0_6], %10 {strides = array<i32>} : memref<256x128xf32, #tpu.memory_space<vmem>>, vector<256x128xf32>,
    %c0_i32_7 = arith.constant 0 : i32
    %12 = arith.cmpi eq, %arg1, %c0_i32_7 : i32
    %13 = arith.extui %12 : i1 to i32
    %c0_i32_8 = arith.constant 0 : i32
    %14 = arith.cmpi ne, %13, %c0_i32_8 : i32
    scf.if %14 {
      %c0_9 = arith.constant 0 : index
      %c0_10 = arith.constant 0 : index
      %15 = vector.load %arg7[%c0_9, %c0_10] : memref<256x128xf32, #tpu.memory_space<vmem>>, vector<256x128xf32>
      %16 = arith.truncf %15 : vector<256x128xf32> to vector<256x128xbf16>
      %c0_11 = arith.constant 0 : index
      %c0_12 = arith.constant 0 : index
      %17 = vector.load %arg4[%c0_11, %c0_12] : memref<128x128xbf16, #tpu.memory_space<vmem>>, vector<128x128xbf16>
      %cst_13 = arith.constant dense<0.000000e+00> : vector<256x128xf32>
      %18 = tpu.matmul %16, %17, %cst_13 {dimension_numbers = #tpu.dot_dimension_numbers<[1], [0], [0], [1], [0, 0, 1, 1], [], []>} : vector<256x128xbf16>, vector<128x128xbf16>, vector<256x128xf32> -> vector<256x128xf32>
      %c0_14 = arith.constant 0 : index
      %c0_15 = arith.constant 0 : index
      %19 = vector.load %arg5[%c0_14, %c0_15] : memref<1x128xf32, #tpu.memory_space<vmem>>, vector<1x128xf32>
      %20 = vector.broadcast %19 : vector<1x128xf32> to vector<256x128xf32>
      %21 = arith.addf %18, %20 : vector<256x128xf32>
      %cst_16 = arith.constant 0.000000e+00 : f32
      %22 = vector.broadcast %cst_16 : f32 to vector<256x128xf32>
      %23 = arith.maximumf %21, %22 : vector<256x128xf32>
      %24 = arith.truncf %23 : vector<256x128xf32> to vector<256x128xbf16>
      %c0_17 = arith.constant 0 : index
      %c0_18 = arith.constant 0 : index
      %25 = vector.load %arg6[%c0_17, %c0_18] : memref<256x128xbf16, #tpu.memory_space<vmem>>, vector<256x128xbf16>
      tpu.vector_store %arg6[%c0_17, %c0_18], %24 {strides = array<i32>} : memref<256x128xbf16, #tpu.memory_space<vmem>>, vector<256x128xbf16>,
    } else {
    }
    return
  }
  func.func @transform_0(%arg0: i32, %arg1: i32) -> (i32, i32) {
    %c0_i32 = arith.constant 0 : i32
    return %arg0, %arg1 : i32, i32
  }
  func.func @transform_1(%arg0: i32, %arg1: i32) -> (i32, i32) {
    %c0_i32 = arith.constant 0 : i32
    %c0_i32_0 = arith.constant 0 : i32
    %c0_i32_1 = arith.constant 0 : i32
    return %c0_i32, %c0_i32_0 : i32, i32
  }
  func.func @transform_2(%arg0: i32, %arg1: i32) -> (i32, i32) {
    %c0_i32 = arith.constant 0 : i32
    %c0_i32_0 = arith.constant 0 : i32
    %c0_i32_1 = arith.constant 0 : i32
    return %c0_i32, %c0_i32_0 : i32, i32
  }
  func.func @transform_3(%arg0: i32, %arg1: i32) -> (i32, i32) {
    %c0_i32 = arith.constant 0 : i32
    %c0_i32_0 = arith.constant 0 : i32
    %c0_i32_1 = arith.constant 0 : i32
    return %c0_i32, %c0_i32_0 : i32, i32
  }
  func.func @transform_4(%arg0: i32, %arg1: i32) -> (i32, i32) {
    %c0_i32 = arith.constant 0 : i32
    %c0_i32_0 = arith.constant 0 : i32
    return %arg0, %c0_i32 : i32, i32
  }
}

module attributes {stable_mosaic.version = 11 : i64} {
  func.func @_gcn_layer_kernel(%arg0: i32, %arg1: i32, %arg2: memref<256x256xbf16, #tpu.memory_space<vmem>>, %arg3: memref<256x128xbf16, #tpu.memory_space<vmem>>, %arg4: memref<128x128xbf16, #tpu.memory_space<vmem>>, %arg5: memref<1x128xf32, #tpu.memory_space<vmem>>, %arg6: memref<256x128xf32, #tpu.memory_space<vmem>>, %arg7: memref<256x128xf32, #tpu.memory_space<vmem>>) attributes {dimension_semantics = [#tpu.dimension_semantics<parallel>, #tpu.dimension_semantics<arbitrary>], iteration_bounds = array<i64: 1, 1>, scalar_prefetch = 0 : i64, scratch_operands = 1 : i64, tpu.core_type = #tpu.core_type<tc>, window_params = [{transform_indices = @transform_0, window_bounds = array<i64: 256, 256>}, {pipeline_mode = #tpu.pipeline_mode<synchronous>, transform_indices = @transform_1, window_bounds = array<i64: 256, 128>}, {pipeline_mode = #tpu.pipeline_mode<synchronous>, transform_indices = @transform_2, window_bounds = array<i64: 128, 128>}, {pipeline_mode = #tpu.pipeline_mode<synchronous>, transform_indices = @transform_3, window_bounds = array<i64: 1, 128>}, {transform_indices = @transform_4, window_bounds = array<i64: 256, 128>}]} {
    %c0_i32 = arith.constant 0 : i32
    %0 = arith.cmpi eq, %arg1, %c0_i32 : i32
    %1 = arith.extui %0 : i1 to i32
    %c0_i32_0 = arith.constant 0 : i32
    %2 = arith.cmpi ne, %1, %c0_i32_0 : i32
    scf.if %2 {
      %cst_9 = arith.constant 0.000000e+00 : f32
      %15 = vector.broadcast %cst_9 : f32 to vector<256x128xf32>
      %c0_10 = arith.constant 0 : index
      %c0_11 = arith.constant 0 : index
      %16 = vector.load %arg7[%c0_10, %c0_11] : memref<256x128xf32, #tpu.memory_space<vmem>>, vector<256x128xf32>
      tpu.vector_store %arg7[%c0_10, %c0_11], %15 {strides = array<i32>} : memref<256x128xf32, #tpu.memory_space<vmem>>, vector<256x128xf32>,
    } else {
    }
    %c256_i32 = arith.constant 256 : i32
    %3 = arith.muli %arg1, %c256_i32 : i32
    %4 = tpu.assume_multiple %3, 256 : i32
    %5 = arith.index_cast %4 : i32 to index
    %c0 = arith.constant 0 : index
    %6 = vector.load %arg3[%5, %c0] : memref<256x128xbf16, #tpu.memory_space<vmem>>, vector<256x128xbf16>
    %c0_1 = arith.constant 0 : index
    %c0_2 = arith.constant 0 : index
    %7 = vector.load %arg7[%c0_1, %c0_2] : memref<256x128xf32, #tpu.memory_space<vmem>>, vector<256x128xf32>
    %c0_3 = arith.constant 0 : index
    %c0_4 = arith.constant 0 : index
    %8 = vector.load %arg2[%c0_3, %c0_4] : memref<256x256xbf16, #tpu.memory_space<vmem>>, vector<256x256xbf16>
    %cst = arith.constant dense<0.000000e+00> : vector<256x128xf32>
    %9 = tpu.matmul %8, %6, %cst {dimension_numbers = #tpu.dot_dimension_numbers<[1], [0], [0], [1], [0, 0, 1, 1], [], []>} : vector<256x256xbf16>, vector<256x128xbf16>, vector<256x128xf32> -> vector<256x128xf32>
    %10 = arith.addf %7, %9 : vector<256x128xf32>
    %c0_5 = arith.constant 0 : index
    %c0_6 = arith.constant 0 : index
    %11 = vector.load %arg7[%c0_5, %c0_6] : memref<256x128xf32, #tpu.memory_space<vmem>>, vector<256x128xf32>
    tpu.vector_store %arg7[%c0_5, %c0_6], %10 {strides = array<i32>} : memref<256x128xf32, #tpu.memory_space<vmem>>, vector<256x128xf32>,
    %c0_i32_7 = arith.constant 0 : i32
    %12 = arith.cmpi eq, %arg1, %c0_i32_7 : i32
    %13 = arith.extui %12 : i1 to i32
    %c0_i32_8 = arith.constant 0 : i32
    %14 = arith.cmpi ne, %13, %c0_i32_8 : i32
    scf.if %14 {
      %c0_9 = arith.constant 0 : index
      %c0_10 = arith.constant 0 : index
      %15 = vector.load %arg7[%c0_9, %c0_10] : memref<256x128xf32, #tpu.memory_space<vmem>>, vector<256x128xf32>
      %16 = arith.truncf %15 : vector<256x128xf32> to vector<256x128xbf16>
      %c0_11 = arith.constant 0 : index
      %c0_12 = arith.constant 0 : index
      %17 = vector.load %arg4[%c0_11, %c0_12] : memref<128x128xbf16, #tpu.memory_space<vmem>>, vector<128x128xbf16>
      %cst_13 = arith.constant dense<0.000000e+00> : vector<256x128xf32>
      %18 = tpu.matmul %16, %17, %cst_13 {dimension_numbers = #tpu.dot_dimension_numbers<[1], [0], [0], [1], [0, 0, 1, 1], [], []>} : vector<256x128xbf16>, vector<128x128xbf16>, vector<256x128xf32> -> vector<256x128xf32>
      %c0_14 = arith.constant 0 : index
      %c0_15 = arith.constant 0 : index
      %19 = vector.load %arg5[%c0_14, %c0_15] : memref<1x128xf32, #tpu.memory_space<vmem>>, vector<1x128xf32>
      %20 = vector.broadcast %19 : vector<1x128xf32> to vector<256x128xf32>
      %21 = arith.addf %18, %20 : vector<256x128xf32>
      %c0_16 = arith.constant 0 : index
      %c0_17 = arith.constant 0 : index
      %22 = vector.load %arg6[%c0_16, %c0_17] : memref<256x128xf32, #tpu.memory_space<vmem>>, vector<256x128xf32>
      tpu.vector_store %arg6[%c0_16, %c0_17], %21 {strides = array<i32>} : memref<256x128xf32, #tpu.memory_space<vmem>>, vector<256x128xf32>,
    } else {
    }
    return
  }
  func.func @transform_0(%arg0: i32, %arg1: i32) -> (i32, i32) {
    %c0_i32 = arith.constant 0 : i32
    return %arg0, %arg1 : i32, i32
  }
  func.func @transform_1(%arg0: i32, %arg1: i32) -> (i32, i32) {
    %c0_i32 = arith.constant 0 : i32
    %c0_i32_0 = arith.constant 0 : i32
    %c0_i32_1 = arith.constant 0 : i32
    return %c0_i32, %c0_i32_0 : i32, i32
  }
  func.func @transform_2(%arg0: i32, %arg1: i32) -> (i32, i32) {
    %c0_i32 = arith.constant 0 : i32
    %c0_i32_0 = arith.constant 0 : i32
    %c0_i32_1 = arith.constant 0 : i32
    return %c0_i32, %c0_i32_0 : i32, i32
  }
  func.func @transform_3(%arg0: i32, %arg1: i32) -> (i32, i32) {
    %c0_i32 = arith.constant 0 : i32
    %c0_i32_0 = arith.constant 0 : i32
    %c0_i32_1 = arith.constant 0 : i32
    return %c0_i32, %c0_i32_0 : i32, i32
  }
  func.func @transform_4(%arg0: i32, %arg1: i32) -> (i32, i32) {
    %c0_i32 = arith.constant 0 : i32
    %c0_i32_0 = arith.constant 0 : i32
    return %arg0, %c0_i32 : i32, i32
  }
}

</mosaic_0001>

<bundles_post_ra>
// kernel: gcn_forward.3
= control target key start
LH: loop header
LB: loop body
LE: loop exit
PB: predicated region body
PF: predicated region fallthrough
CT: control target
= control target key end

     0   :  { %s1648_s1 = inlined_call_operand.vmem [shape: bf16[256,128], index: 1, kind: input, shape index: {}]   ;;  %s1649_s0 = inlined_call_operand.vmem [shape: bf16[256,256], index: 0, kind: input, shape index: {}]   ;;  %s1650_s2 = inlined_call_operand.vmem [shape: bf16[128,128], index: 2, kind: input, shape index: {}]   ;;  %s1651_s3 = inlined_call_operand.vmem [shape: f32[1,128], index: 3, kind: input, shape index: {}]   ;;  %s1652_s4 = inlined_call_operand.vmem [shape: f32[256,128], index: 4, kind: output, shape index: {}]  }
   0x1   :  { %v1214_v0 = vld [vmem:[%s1648_s1 + $0x40] sm:$0xff]   ;;  %v1216_v2 = vld [vmem:[%s1648_s1 + $0x48] sm:$0xff]   ;;  %v1218_v4 = vld [vmem:[%s1648_s1 + $0x50] sm:$0xff]  }
   0x2   :  { %v1215_v1 = vld [vmem:[%s1648_s1] sm:$0xff]   ;;  %1014 = vmatprep.subr.bf16.mxu0 %v1214_v0  ;;  %1198 = vmatprep.subr.bf16.mxu1 %v1214_v0  ;;  %v1217_v3 = vld [vmem:[%s1648_s1 + $0x8] sm:$0xff]   ;;  %v1219_v5 = vld [vmem:[%s1648_s1 + $0x10] sm:$0xff]  }
   0x3   :  { %1015 = vmatpush3.bf16.msra.mxu0 %v1215_v1  ;;  %1206 = vmatpush3.bf16.msra.mxu1 %v1215_v1  ;;  %v1220_v6 = vld [vmem:[%s1648_s1 + $0x58] sm:$0xff]   ;;  %v1222_v8 = vld [vmem:[%s1648_s1 + $0x60] sm:$0xff]   ;;  %v1224_v10 = vld [vmem:[%s1648_s1 + $0x68] sm:$0xff]  }
   0x4   :  { %1016 = vmatprep.subr.bf16.mxu0 %v1216_v2  ;;  %1199 = vmatprep.subr.bf16.mxu1 %v1216_v2  ;;  %v1221_v7 = vld [vmem:[%s1648_s1 + $0x18] sm:$0xff]   ;;  %v1223_v9 = vld [vmem:[%s1648_s1 + $0x20] sm:$0xff]   ;;  %v1225_v12 = vld [vmem:[%s1648_s1 + $0x28] sm:$0xff]  }
   0x5   :  { %v1232_v11 = vld [vmem:[%s1649_s0 + $0x4] ss:$8 sps:$4 sm:$0xff]   ;;  %v1226_v13 = vld [vmem:[%s1648_s1 + $0x70] sm:$0xff]   ;;  %v1228_v15 = vld [vmem:[%s1648_s1 + $0x78] sm:$0xff]  }
   0x6   :  { %443 = vmatprep.mubr.bf16.mxu0 %v1232_v11  ;;  %v1227_v14 = vld [vmem:[%s1648_s1 + $0x30] sm:$0xff]   ;;  %v1229_v16 = vld [vmem:[%s1648_s1 + $0x38] sm:$0xff]   ;;  %v1230_v17 = vld [vmem:[%s1649_s0] ss:$8 sps:$4 sm:$0xff]  }
   0x7   :  { %1017 = vmatpush3.bf16.msra.mxu0 %v1217_v3  ;;  %1207 = vmatpush3.bf16.msra.mxu1 %v1217_v3  ;;  %v1262_v18 = vld [vmem:[%s1649_s0 + $0xc4] ss:$8 sps:$4 sm:$0xff]   ;;  %v1233_v19 = vld [vmem:[%s1649_s0 + $0x14] ss:$8 sps:$4 sm:$0xff]   ;;  %v1260_v20 = vld [vmem:[%s1649_s0 + $0xc0] ss:$8 sps:$4 sm:$0xff]  }
   0x8   :  { %1018 = vmatprep.subr.bf16.mxu0 %v1218_v4  ;;  %1200 = vmatprep.subr.bf16.mxu1 %v1218_v4  ;;  %v1266_v21 = vld [vmem:[%s1649_s0 + $0xd4] ss:$8 sps:$4 sm:$0xff]   ;;  %v1235_v22 = vld [vmem:[%s1649_s0 + $0x10] ss:$8 sps:$4 sm:$0xff]   ;;  %v1236_v23 = vld [vmem:[%s1649_s0 + $0x24] ss:$8 sps:$4 sm:$0xff]  }
   0x9   :  { %539 = vmatprep.mubr.bf16.mxu1 %v1262_v18  ;;  %v1268_v24 = vld [vmem:[%s1649_s0 + $0xd0] ss:$8 sps:$4 sm:$0xff]   ;;  %v1278_v25 = vld [vmem:[%s1650_s2] sm:$0xff]   ;;  %v1279_v26 = vld [vmem:[%s1650_s2 + $0x8] sm:$0xff]  }
   0xa   :  { %v1272_v27 = vld [vmem:[%s1649_s0 + $0xe4] ss:$8 sps:$4 sm:$0xff]   ;;  %v1280_v28 = vld [vmem:[%s1650_s2 + $0x10] sm:$0xff]   ;;  %v1238_v29 = vld [vmem:[%s1649_s0 + $0x20] ss:$8 sps:$4 sm:$0xff]  }
   0xb   :  { %1019 = vmatpush3.bf16.msra.mxu0 %v1219_v5  ;;  %1208 = vmatpush3.bf16.msra.mxu1 %v1219_v5  ;;  %v1281_v30 = vld [vmem:[%s1650_s2 + $0x18] sm:$0xff]   ;;  %v1274_v32 = vld [vmem:[%s1649_s0 + $0xe0] ss:$8 sps:$4 sm:$0xff]   ;;  %v1242_v35 = vld [vmem:[%s1649_s0 + $0x44] ss:$8 sps:$4 sm:$0xff]  }
   0xc   :  { %1020 = vmatprep.subr.bf16.mxu0 %v1220_v6  ;;  %1201 = vmatprep.subr.bf16.mxu1 %v1220_v6  ;;  %v1239_v31 = vld [vmem:[%s1649_s0 + $0x34] ss:$8 sps:$4 sm:$0xff]   ;;  %v1241_v34 = vld [vmem:[%s1649_s0 + $0x30] ss:$8 sps:$4 sm:$0xff]   ;;  %v1244_v37 = vld [vmem:[%s1649_s0 + $0x40] ss:$8 sps:$4 sm:$0xff]  }
   0xd   :  { %v1275_v33 = vld [vmem:[%s1649_s0 + $0xf4] ss:$8 sps:$4 sm:$0xff]   ;;  %v1277_v36 = vld [vmem:[%s1649_s0 + $0xf0] ss:$8 sps:$4 sm:$0xff]   ;;  %v1248_v40 = vld [vmem:[%s1649_s0 + $0x64] ss:$8 sps:$4 sm:$0xff]  }
   0xe   :  { %v1245_v38 = vld [vmem:[%s1649_s0 + $0x54] ss:$8 sps:$4 sm:$0xff]   ;;  %v1247_v39 = vld [vmem:[%s1649_s0 + $0x50] ss:$8 sps:$4 sm:$0xff]   ;;  %v1250_v41 = vld [vmem:[%s1649_s0 + $0x60] ss:$8 sps:$4 sm:$0xff]  }
   0xf   :  { %1021 = vmatpush3.bf16.msra.mxu0 %v1221_v7  ;;  %1209 = vmatpush3.bf16.msra.mxu1 %v1221_v7  ;;  %v1251_v42 = vld [vmem:[%s1649_s0 + $0x74] ss:$8 sps:$4 sm:$0xff]   ;;  %v1253_v43 = vld [vmem:[%s1649_s0 + $0x70] ss:$8 sps:$4 sm:$0xff]   ;;  %v1254_v44 = vld [vmem:[%s1649_s0 + $0x84] ss:$8 sps:$4 sm:$0xff]  }
  0x10   :  { %1022 = vmatprep.subr.bf16.mxu0 %v1222_v8  ;;  %1202 = vmatprep.subr.bf16.mxu1 %v1222_v8  ;;  %v1256_v45 = vld [vmem:[%s1649_s0 + $0x80] ss:$8 sps:$4 sm:$0xff]   ;;  %v1257_v46 = vld [vmem:[%s1649_s0 + $0x94] ss:$8 sps:$4 sm:$0xff]   ;;  %v1259_v47 = vld [vmem:[%s1649_s0 + $0x90] ss:$8 sps:$4 sm:$0xff]  }
  0x11   :  { %v1263_v48 = vld [vmem:[%s1649_s0 + $0xa4] ss:$8 sps:$4 sm:$0xff]   ;;  %v1265_v49 = vld [vmem:[%s1649_s0 + $0xa0] ss:$8 sps:$4 sm:$0xff]   ;;  %v1269_v50 = vld [vmem:[%s1649_s0 + $0xb4] ss:$8 sps:$4 sm:$0xff]  }
  0x12   :  { %v1282_v51 = vld [vmem:[%s1650_s2 + $0x20] sm:$0xff]   ;;  %v1271_v52 = vld [vmem:[%s1649_s0 + $0xb0] ss:$8 sps:$4 sm:$0xff]   ;;  %v1283_v53 = vld [vmem:[%s1650_s2 + $0x28] sm:$0xff]  }
  0x13   :  { %1023 = vmatpush3.bf16.msra.mxu0 %v1223_v9  ;;  %1210 = vmatpush3.bf16.msra.mxu1 %v1223_v9  ;;  %v1284_v54 = vld [vmem:[%s1650_s2 + $0x30] sm:$0xff]   ;;  %v1285_v55 = vld [vmem:[%s1650_s2 + $0x38] sm:$0xff]  }
  0x14   :  { %1024 = vmatprep.subr.bf16.mxu0 %v1224_v10  ;;  %1203 = vmatprep.subr.bf16.mxu1 %v1224_v10 }
  0x17   :  { %1025 = vmatpush3.bf16.msra.mxu0 %v1225_v12  ;;  %1211 = vmatpush3.bf16.msra.mxu1 %v1225_v12 }
  0x18   :  { %1026 = vmatprep.subr.bf16.mxu0 %v1226_v13  ;;  %1204 = vmatprep.subr.bf16.mxu1 %v1226_v13 }
  0x1b   :  { %1027 = vmatpush3.bf16.msra.mxu0 %v1227_v14  ;;  %1212 = vmatpush3.bf16.msra.mxu1 %v1227_v14 }
  0x1c   :  { %1028 = vmatprep.subr.bf16.mxu0 %v1228_v15  ;;  %1205 = vmatprep.subr.bf16.mxu1 %v1228_v15 }
  0x1f   :  { %1029 = vmatpush3.bf16.msra.mxu0 %v1229_v16  ;;  %1213 = vmatpush3.bf16.msra.mxu1 %v1229_v16 }
  0x20   :  { %1150 = vmatprep.subr.bf16.mxu1 %v1278_v25 }
  0x22   :  { %444 = vmatmul.mubr.bf16.vlgmr.msra.gmra.mrb[0].mxu0 %v1230_v17  ;;  %540 = vmatmul.mubr.bf16.vlgmr.msra.gmra.mrb[0].mxu1 %v1260_v20 }
  0x23   :  { %451 = vmatprep.mubr.bf16.mxu0 %v1233_v19  ;;  %547 = vmatprep.mubr.bf16.mxu1 %v1266_v21 }
  0x24   :  { %1151 = vmatpush3.bf16.msra.mxu1 %v1278_v25 }
  0x25   :  { %1152 = vmatprep.subr.bf16.mxu1 %v1279_v26 }
  0x28   :  { %1153 = vmatpush3.bf16.msra.mxu1 %v1279_v26 }
  0x29   :  { %1154 = vmatprep.subr.bf16.mxu1 %v1280_v28 }
  0x2a   :  { %452 = vmatmul.mubr.bf16.gmra.mrb[4].mxu0 %v1235_v22  ;;  %548 = vmatmul.mubr.bf16.gmra.mrb[4].mxu1 %v1268_v24 }
  0x2b   :  { %459 = vmatprep.mubr.bf16.mxu0 %v1236_v23  ;;  %555 = vmatprep.mubr.bf16.mxu1 %v1272_v27 }
  0x2c   :  { %1155 = vmatpush3.bf16.msra.mxu1 %v1280_v28 }
  0x2d   :  { %1156 = vmatprep.subr.bf16.mxu1 %v1281_v30 }
  0x30   :  { %1157 = vmatpush3.bf16.msra.mxu1 %v1281_v30 }
  0x31   :  { %1158 = vmatprep.subr.bf16.mxu1 %v1282_v51 }
  0x32   :  { %460 = vmatmul.mubr.bf16.gmra.mrb[8].mxu0 %v1238_v29  ;;  %556 = vmatmul.mubr.bf16.gmra.mrb[8].mxu1 %v1274_v32 }
  0x33   :  { %467 = vmatprep.mubr.bf16.mxu0 %v1239_v31  ;;  %563 = vmatprep.mubr.bf16.mxu1 %v1275_v33 }
  0x34   :  { %1159 = vmatpush3.bf16.msra.mxu1 %v1282_v51 }
  0x35   :  { %1160 = vmatprep.subr.bf16.mxu1 %v1283_v53 }
  0x38   :  { %1161 = vmatpush3.bf16.msra.mxu1 %v1283_v53 }
  0x39   :  { %1162 = vmatprep.subr.bf16.mxu1 %v1284_v54 }
  0x3a   :  { %468 = vmatmul.mubr.bf16.gmra.mrb[12].mxu0 %v1241_v34  ;;  %564 = vmatmul.mubr.bf16.gmra.mrb[12].mxu1 %v1277_v36 }
  0x3b   :  { %475 = vmatprep.mubr.bf16.mxu0 %v1242_v35 }
  0x3c   :  { %1163 = vmatpush3.bf16.msra.mxu1 %v1284_v54 }
  0x3d   :  { %1164 = vmatprep.subr.bf16.mxu1 %v1285_v55 }
  0x40   :  { %1165 = vmatpush3.bf16.msra.mxu1 %v1285_v55 }
  0x42   :  { %476 = vmatmul.mubr.bf16.gmra.mrb[16].mxu0 %v1244_v37 }
  0x43   :  { %483 = vmatprep.mubr.bf16.mxu0 %v1245_v38 }
  0x4a   :  { %484 = vmatmul.mubr.bf16.gmra.mrb[20].mxu0 %v1247_v39 }
  0x4b   :  { %491 = vmatprep.mubr.bf16.mxu0 %v1248_v40 }
  0x52   :  { %492 = vmatmul.mubr.bf16.gmra.mrb[24].mxu0 %v1250_v41 }
  0x53   :  { %499 = vmatprep.mubr.bf16.mxu0 %v1251_v42 }
  0x5a   :  { %500 = vmatmul.mubr.bf16.gmra.mrb[28].mxu0 %v1253_v43 }
  0x5b   :  { %507 = vmatprep.mubr.bf16.mxu0 %v1254_v44 }
  0x62   :  { %508 = vmatmul.mubr.bf16.gmra.mrb[32].mxu0 %v1256_v45 }
  0x63   :  { %515 = vmatprep.mubr.bf16.mxu0 %v1257_v46 }
  0x6a   :  { %516 = vmatmul.mubr.bf16.gmra.mrb[36].mxu0 %v1259_v47 }
  0x6b   :  { %523 = vmatprep.mubr.bf16.mxu0 %v1263_v48 }
  0x72   :  { %524 = vmatmul.mubr.bf16.gmra.mrb[40].mxu0 %v1265_v49 }
  0x73   :  { %531 = vmatprep.mubr.bf16.mxu0 %v1269_v50 }
  0x7a   :  { %532 = vmatmul.mubr.bf16.gmra.mrb[44].mxu0 %v1271_v52 }
  0xf5   :  { %v1030_v56 = vpop.f32.mrb[0].mxu0  ;;  %v1102_v58 = vpop.f32.mrb[0].mxu1 }
  0xf6   :  { %v1031_v57 = vpop.f32.mrb[1].mxu0  ;;  %v1103_v61 = vpop.f32.mrb[1].mxu1 }
  0xf7   :  { %v1032_v59 = vadd.f32 %v1031_v57, %v1030_v56  ;;  %v1033_v60 = vpop.f32.mrb[2].mxu0  ;;  %v1479_v63 = vadd.f32 %v1103_v61, %v1102_v58  ;;  %v1105_v0 = vpop.f32.mrb[2].mxu1 }
  0xf8   :  { %v1034_v62 = vpop.f32.mrb[3].mxu0  ;;  %v1106_v2 = vpop.f32.mrb[3].mxu1 }
  0xf9   :  { %v1035_v1 = vadd.f32 %v1034_v62, %v1033_v60  ;;  %v1481_v3 = vadd.f32 %v1106_v2, %v1105_v0 }
  0xfb   :  { %v671_v4 = vpack.c.bf16 %v1035_v1, %v1032_v59  ;;  %v683_v5 = vpack.c.bf16 %v1481_v3, %v1479_v63 }
  0xfd   :  { %v1036_v6 = vpop.f32.mrb[4].mxu0  ;;  %1166 = vmatprep.mubr.bf16.mxu1 %v671_v4  ;;  %v1108_v8 = vpop.f32.mrb[4].mxu1 }
  0xfe   :  { %v1037_v7 = vpop.f32.mrb[5].mxu0  ;;  %v1109_v11 = vpop.f32.mrb[5].mxu1 }
  0xff   :  { %v1038_v9 = vadd.f32 %v1037_v7, %v1036_v6  ;;  %v1039_v10 = vpop.f32.mrb[6].mxu0  ;;  %v1485_v13 = vadd.f32 %v1109_v11, %v1108_v8  ;;  %v1111_v14 = vpop.f32.mrb[6].mxu1 }
 0x100   :  { %v1040_v12 = vpop.f32.mrb[7].mxu0  ;;  %v1112_v16 = vpop.f32.mrb[7].mxu1 }
 0x101   :  { %v1041_v15 = vadd.f32 %v1040_v12, %v1039_v10  ;;  %v1487_v17 = vadd.f32 %v1112_v16, %v1111_v14 }
 0x103   :  { %v672_v18 = vpack.c.bf16 %v1041_v15, %v1038_v9  ;;  %v684_v19 = vpack.c.bf16 %v1487_v17, %v1485_v13 }
 0x105   :  { %v1042_v20 = vpop.f32.mrb[8].mxu0  ;;  %1167 = vmatmul.mubr.bf16.vlgmr.msra.gmra.mrb[16].mxu1 %v672_v18  ;;  %v1114_v22 = vpop.f32.mrb[8].mxu1 }
 0x106   :  { %v1043_v21 = vpop.f32.mrb[9].mxu0  ;;  %v1115_v25 = vpop.f32.mrb[9].mxu1 }
 0x107   :  { %v1044_v23 = vadd.f32 %v1043_v21, %v1042_v20  ;;  %v1045_v24 = vpop.f32.mrb[10].mxu0  ;;  %v1491_v27 = vadd.f32 %v1115_v25, %v1114_v22  ;;  %v1117_v28 = vpop.f32.mrb[10].mxu1 }
 0x108   :  { %v1046_v26 = vpop.f32.mrb[11].mxu0  ;;  %v1118_v30 = vpop.f32.mrb[11].mxu1 }
 0x109   :  { %v1047_v29 = vadd.f32 %v1046_v26, %v1045_v24  ;;  %v1493_v31 = vadd.f32 %v1118_v30, %v1117_v28 }
 0x10b   :  { %v673_v32 = vpack.c.bf16 %v1047_v29, %v1044_v23  ;;  %v685_v33 = vpack.c.bf16 %v1493_v31, %v1491_v27 }
 0x10d   :  { %v1048_v34 = vpop.f32.mrb[12].mxu0  ;;  %1170 = vmatprep.mubr.bf16.mxu1 %v673_v32  ;;  %v1120_v36 = vpop.f32.mrb[12].mxu1 }
 0x10e   :  { %v1049_v35 = vpop.f32.mrb[13].mxu0  ;;  %v1121_v39 = vpop.f32.mrb[13].mxu1 }
 0x10f   :  { %v1050_v37 = vadd.f32 %v1049_v35, %v1048_v34  ;;  %v1051_v38 = vpop.f32.mrb[14].mxu0  ;;  %v1497_v41 = vadd.f32 %v1121_v39, %v1120_v36  ;;  %v1123_v42 = vpop.f32.mrb[14].mxu1 }
 0x110   :  { %v1052_v40 = vpop.f32.mrb[15].mxu0  ;;  %v1124_v44 = vpop.f32.mrb[15].mxu1 }
 0x111   :  { %v1053_v43 = vadd.f32 %v1052_v40, %v1051_v38  ;;  %v1499_v45 = vadd.f32 %v1124_v44, %v1123_v42 }
 0x113   :  { %v674_v46 = vpack.c.bf16 %v1053_v43, %v1050_v37  ;;  %v686_v47 = vpack.c.bf16 %v1499_v45, %v1497_v41 }
 0x115   :  { %v1054_v48 = vpop.f32.mrb[16].mxu0  ;;  %1171 = vmatmul.mubr.bf16.gmra.mrb[20].mxu1 %v674_v46 }
 0x116   :  { %v1055_v49 = vpop.f32.mrb[17].mxu0 }
 0x117   :  { %v1056_v50 = vadd.f32 %v1055_v49, %v1054_v48  ;;  %v1057_v51 = vpop.f32.mrb[18].mxu0 }
 0x118   :  { %v1058_v52 = vpop.f32.mrb[19].mxu0 }
 0x119   :  { %v1059_v53 = vadd.f32 %v1058_v52, %v1057_v51  ;;  %v1518_v52 = vld [vmem:[%s1651_s3] ss:$0 sm:$0xff] }
 0x11b   :  { %v675_v54 = vpack.c.bf16 %v1059_v53, %v1056_v50 }
 0x11d   :  { %v1060_v55 = vpop.f32.mrb[20].mxu0  ;;  %1174 = vmatprep.mubr.bf16.mxu1 %v675_v54 }
 0x11e   :  { %v1061_v56 = vpop.f32.mrb[21].mxu0 }
 0x11f   :  { %v1062_v57 = vadd.f32 %v1061_v56, %v1060_v55  ;;  %v1063_v58 = vpop.f32.mrb[22].mxu0 }
 0x120   :  { %v1064_v59 = vpop.f32.mrb[23].mxu0 }
 0x121   :  { %v1065_v60 = vadd.f32 %v1064_v59, %v1063_v58 }
 0x123   :  { %v676_v61 = vpack.c.bf16 %v1065_v60, %v1062_v57 }
 0x125   :  { %v1066_v62 = vpop.f32.mrb[24].mxu0  ;;  %1175 = vmatmul.mubr.bf16.gmra.mrb[24].mxu1 %v676_v61 }
 0x126   :  { %v1067_v0 = vpop.f32.mrb[25].mxu0 }
 0x127   :  { %v1068_v1 = vadd.f32 %v1067_v0, %v1066_v62  ;;  %v1069_v2 = vpop.f32.mrb[26].mxu0 }
 0x128   :  { %v1070_v4 = vpop.f32.mrb[27].mxu0 }
 0x129   :  { %v1071_v6 = vadd.f32 %v1070_v4, %v1069_v2 }
 0x12b   :  { %v677_v7 = vpack.c.bf16 %v1071_v6, %v1068_v1 }
 0x12d   :  { %v1072_v8 = vpop.f32.mrb[28].mxu0  ;;  %1178 = vmatprep.mubr.bf16.mxu1 %v677_v7 }
 0x12e   :  { %v1073_v9 = vpop.f32.mrb[29].mxu0 }
 0x12f   :  { %v1074_v10 = vadd.f32 %v1073_v9, %v1072_v8  ;;  %v1075_v11 = vpop.f32.mrb[30].mxu0 }
 0x130   :  { %v1076_v12 = vpop.f32.mrb[31].mxu0 }
 0x131   :  { %v1077_v14 = vadd.f32 %v1076_v12, %v1075_v11 }
 0x133   :  { %v678_v15 = vpack.c.bf16 %v1077_v14, %v1074_v10 }
 0x135   :  { %v1078_v16 = vpop.f32.mrb[32].mxu0  ;;  %1179 = vmatmul.mubr.bf16.gmra.mrb[28].mxu1 %v678_v15 }
 0x136   :  { %v1079_v18 = vpop.f32.mrb[33].mxu0 }
 0x137   :  { %v1080_v20 = vadd.f32 %v1079_v18, %v1078_v16  ;;  %v1081_v21 = vpop.f32.mrb[34].mxu0 }
 0x138   :  { %v1082_v22 = vpop.f32.mrb[35].mxu0 }
 0x139   :  { %v1083_v23 = vadd.f32 %v1082_v22, %v1081_v21 }
 0x13b   :  { %v679_v24 = vpack.c.bf16 %v1083_v23, %v1080_v20 }
 0x13d   :  { %v1084_v25 = vpop.f32.mrb[36].mxu0  ;;  %1182 = vmatprep.mubr.bf16.mxu1 %v679_v24 }
 0x13e   :  { %v1085_v26 = vpop.f32.mrb[37].mxu0 }
 0x13f   :  { %v1086_v28 = vadd.f32 %v1085_v26, %v1084_v25  ;;  %v1087_v29 = vpop.f32.mrb[38].mxu0 }
 0x140   :  { %v1088_v30 = vpop.f32.mrb[39].mxu0 }
 0x141   :  { %v1089_v32 = vadd.f32 %v1088_v30, %v1087_v29 }
 0x143   :  { %v680_v34 = vpack.c.bf16 %v1089_v32, %v1086_v28 }
 0x145   :  { %v1090_v35 = vpop.f32.mrb[40].mxu0  ;;  %1183 = vmatmul.mubr.bf16.gmra.mrb[32].mxu1 %v680_v34 }
 0x146   :  { %v1091_v36 = vpop.f32.mrb[41].mxu0 }
 0x147   :  { %v1092_v37 = vadd.f32 %v1091_v36, %v1090_v35  ;;  %v1093_v38 = vpop.f32.mrb[42].mxu0 }
 0x148   :  { %v1094_v39 = vpop.f32.mrb[43].mxu0 }
 0x149   :  { %v1095_v40 = vadd.f32 %v1094_v39, %v1093_v38 }
 0x14b   :  { %v681_v42 = vpack.c.bf16 %v1095_v40, %v1092_v37 }
 0x14d   :  { %v1096_v43 = vpop.f32.mrb[44].mxu0  ;;  %1186 = vmatprep.mubr.bf16.mxu1 %v681_v42 }
 0x14e   :  { %v1097_v44 = vpop.f32.mrb[45].mxu0 }
 0x14f   :  { %v1098_v46 = vadd.f32 %v1097_v44, %v1096_v43  ;;  %v1099_v48 = vpop.f32.mrb[46].mxu0 }
 0x150   :  { %v1100_v49 = vpop.f32.mrb[47].mxu0 }
 0x151   :  { %v1101_v50 = vadd.f32 %v1100_v49, %v1099_v48 }
 0x153   :  { %v682_v51 = vpack.c.bf16 %v1101_v50, %v1098_v46 }
 0x155   :  { %1187 = vmatmul.mubr.bf16.gmra.mrb[36].mxu1 %v682_v51 }
 0x156   :  { %1190 = vmatprep.mubr.bf16.mxu1 %v683_v5 }
 0x15d   :  { %1191 = vmatmul.mubr.bf16.gmra.mrb[40].mxu1 %v684_v19 }
 0x15e   :  { %1194 = vmatprep.mubr.bf16.mxu1 %v685_v33 }
 0x165   :  { %1195 = vmatmul.mubr.bf16.gmra.mrb[44].mxu1 %v686_v47 }
 0x1d8   :  { %v1168_v53 = vpop.f32.mrb[16].mxu1 }
 0x1d9   :  { %v801_v63 = vadd.f32 %v1168_v53, %v1518_v52  ;;  %v792_v3 = vpop.f32.mrb[17].mxu1 }
 0x1da   :  { %v793_v5 = vadd.f32 %v1518_v52, %v792_v3  ;;  %v1169_v13 = vpop.f32.mrb[18].mxu1 }
 0x1db   :  { %921 = vst [vmem:[%s1652_s4 + $0x10] sm:$0xff] %v801_v63  ;;  %v804_v17 = vadd.f32 %v1169_v13, %v1518_v52  ;;  %v795_v19 = vpop.f32.mrb[19].mxu1 }
 0x1dc   :  { %919 = vst [vmem:[%s1652_s4] sm:$0xff] %v793_v5  ;;  %v796_v27 = vadd.f32 %v1518_v52, %v795_v19 }
 0x1dd   :  { %922 = vst [vmem:[%s1652_s4 + $0x18] sm:$0xff] %v804_v17 }
 0x1de   :  { %920 = vst [vmem:[%s1652_s4 + $0x8] sm:$0xff] %v796_v27 }
 0x1e8   :  { %v1172_v31 = vpop.f32.mrb[20].mxu1 }
 0x1e9   :  { %v817_v33 = vadd.f32 %v1172_v31, %v1518_v52  ;;  %v808_v41 = vpop.f32.mrb[21].mxu1 }
 0x1ea   :  { %v809_v45 = vadd.f32 %v1518_v52, %v808_v41  ;;  %v1173_v47 = vpop.f32.mrb[22].mxu1 }
 0x1eb   :  { %925 = vst [vmem:[%s1652_s4 + $0x30] sm:$0xff] %v817_v33  ;;  %v820_v54 = vadd.f32 %v1173_v47, %v1518_v52  ;;  %v811_v55 = vpop.f32.mrb[23].mxu1 }
 0x1ec   :  { %923 = vst [vmem:[%s1652_s4 + $0x20] sm:$0xff] %v809_v45  ;;  %v812_v56 = vadd.f32 %v1518_v52, %v811_v55 }
 0x1ed   :  { %926 = vst [vmem:[%s1652_s4 + $0x38] sm:$0xff] %v820_v54 }
 0x1ee   :  { %924 = vst [vmem:[%s1652_s4 + $0x28] sm:$0xff] %v812_v56 }
 0x1f8   :  { %v1176_v57 = vpop.f32.mrb[24].mxu1 }
 0x1f9   :  { %v833_v58 = vadd.f32 %v1176_v57, %v1518_v52  ;;  %v824_v59 = vpop.f32.mrb[25].mxu1 }
 0x1fa   :  { %v825_v60 = vadd.f32 %v1518_v52, %v824_v59  ;;  %v1177_v61 = vpop.f32.mrb[26].mxu1 }
 0x1fb   :  { %929 = vst [vmem:[%s1652_s4 + $0x50] sm:$0xff] %v833_v58  ;;  %v836_v62 = vadd.f32 %v1177_v61, %v1518_v52  ;;  %v827_v0 = vpop.f32.mrb[27].mxu1 }
 0x1fc   :  { %927 = vst [vmem:[%s1652_s4 + $0x40] sm:$0xff] %v825_v60  ;;  %v828_v1 = vadd.f32 %v1518_v52, %v827_v0 }
 0x1fd   :  { %930 = vst [vmem:[%s1652_s4 + $0x58] sm:$0xff] %v836_v62 }
 0x1fe   :  { %928 = vst [vmem:[%s1652_s4 + $0x48] sm:$0xff] %v828_v1 }
 0x208   :  { %v1180_v2 = vpop.f32.mrb[28].mxu1 }
 0x209   :  { %v849_v4 = vadd.f32 %v1180_v2, %v1518_v52  ;;  %v840_v6 = vpop.f32.mrb[29].mxu1 }
 0x20a   :  { %v841_v7 = vadd.f32 %v1518_v52, %v840_v6  ;;  %v1181_v8 = vpop.f32.mrb[30].mxu1 }
 0x20b   :  { %933 = vst [vmem:[%s1652_s4 + $0x70] sm:$0xff] %v849_v4  ;;  %v852_v9 = vadd.f32 %v1181_v8, %v1518_v52  ;;  %v843_v10 = vpop.f32.mrb[31].mxu1 }
 0x20c   :  { %931 = vst [vmem:[%s1652_s4 + $0x60] sm:$0xff] %v841_v7  ;;  %v844_v11 = vadd.f32 %v1518_v52, %v843_v10 }
 0x20d   :  { %934 = vst [vmem:[%s1652_s4 + $0x78] sm:$0xff] %v852_v9 }
 0x20e   :  { %932 = vst [vmem:[%s1652_s4 + $0x68] sm:$0xff] %v844_v11 }
 0x218   :  { %v1184_v12 = vpop.f32.mrb[32].mxu1 }
 0x219   :  { %v865_v14 = vadd.f32 %v1184_v12, %v1518_v52  ;;  %v856_v15 = vpop.f32.mrb[33].mxu1 }
 0x21a   :  { %v857_v16 = vadd.f32 %v1518_v52, %v856_v15  ;;  %v1185_v18 = vpop.f32.mrb[34].mxu1 }
 0x21b   :  { %937 = vst [vmem:[%s1652_s4 + $0x90] sm:$0xff] %v865_v14  ;;  %v868_v20 = vadd.f32 %v1185_v18, %v1518_v52  ;;  %v859_v21 = vpop.f32.mrb[35].mxu1 }
 0x21c   :  { %935 = vst [vmem:[%s1652_s4 + $0x80] sm:$0xff] %v857_v16  ;;  %v860_v22 = vadd.f32 %v1518_v52, %v859_v21 }
 0x21d   :  { %938 = vst [vmem:[%s1652_s4 + $0x98] sm:$0xff] %v868_v20 }
 0x21e   :  { %936 = vst [vmem:[%s1652_s4 + $0x88] sm:$0xff] %v860_v22 }
 0x228   :  { %v1188_v23 = vpop.f32.mrb[36].mxu1 }
 0x229   :  { %v881_v24 = vadd.f32 %v1188_v23, %v1518_v52  ;;  %v872_v25 = vpop.f32.mrb[37].mxu1 }
 0x22a   :  { %v873_v26 = vadd.f32 %v1518_v52, %v872_v25  ;;  %v1189_v28 = vpop.f32.mrb[38].mxu1 }
 0x22b   :  { %941 = vst [vmem:[%s1652_s4 + $0xb0] sm:$0xff] %v881_v24  ;;  %v884_v29 = vadd.f32 %v1189_v28, %v1518_v52  ;;  %v875_v30 = vpop.f32.mrb[39].mxu1 }
 0x22c   :  { %939 = vst [vmem:[%s1652_s4 + $0xa0] sm:$0xff] %v873_v26  ;;  %v876_v32 = vadd.f32 %v1518_v52, %v875_v30 }
 0x22d   :  { %942 = vst [vmem:[%s1652_s4 + $0xb8] sm:$0xff] %v884_v29 }
 0x22e   :  { %940 = vst [vmem:[%s1652_s4 + $0xa8] sm:$0xff] %v876_v32 }
 0x230   :  { %v1192_v34 = vpop.f32.mrb[40].mxu1 }
 0x231   :  { %v897_v35 = vadd.f32 %v1192_v34, %v1518_v52  ;;  %v888_v36 = vpop.f32.mrb[41].mxu1 }
 0x232   :  { %v889_v37 = vadd.f32 %v1518_v52, %v888_v36  ;;  %v1193_v38 = vpop.f32.mrb[42].mxu1 }
 0x233   :  { %945 = vst [vmem:[%s1652_s4 + $0xd0] sm:$0xff] %v897_v35  ;;  %v900_v39 = vadd.f32 %v1193_v38, %v1518_v52  ;;  %v891_v40 = vpop.f32.mrb[43].mxu1 }
 0x234   :  { %943 = vst [vmem:[%s1652_s4 + $0xc0] sm:$0xff] %v889_v37  ;;  %v892_v42 = vadd.f32 %v1518_v52, %v891_v40 }
 0x235   :  { %946 = vst [vmem:[%s1652_s4 + $0xd8] sm:$0xff] %v900_v39 }
 0x236   :  { %944 = vst [vmem:[%s1652_s4 + $0xc8] sm:$0xff] %v892_v42 }
 0x238   :  { %v1196_v43 = vpop.f32.mrb[44].mxu1 }
 0x239   :  { %v913_v44 = vadd.f32 %v1196_v43, %v1518_v52  ;;  %v904_v46 = vpop.f32.mrb[45].mxu1 }
 0x23a   :  { %v905_v48 = vadd.f32 %v1518_v52, %v904_v46  ;;  %v1197_v49 = vpop.f32.mrb[46].mxu1 }
 0x23b   :  { %949 = vst [vmem:[%s1652_s4 + $0xf0] sm:$0xff] %v913_v44  ;;  %v916_v50 = vadd.f32 %v1197_v49, %v1518_v52  ;;  %v907_v51 = vpop.f32.mrb[47].mxu1 }
 0x23c   :  { %947 = vst [vmem:[%s1652_s4 + $0xe0] sm:$0xff] %v905_v48  ;;  %v908_v53 = vadd.f32 %v1518_v52, %v907_v51 }
 0x23d   :  { %950 = vst [vmem:[%s1652_s4 + $0xf8] sm:$0xff] %v916_v50 }
 0x23e   :  { %948 = vst [vmem:[%s1652_s4 + $0xe8] sm:$0xff] %v908_v53 }

// kernel: gcn_forward.2
= control target key start
LH: loop header
LB: loop body
LE: loop exit
PB: predicated region body
PF: predicated region fallthrough
CT: control target
= control target key end

     0   :  { %s1919_s1 = inlined_call_operand.vmem [shape: bf16[256,128], index: 1, kind: input, shape index: {}]   ;;  %s1920_s0 = inlined_call_operand.vmem [shape: bf16[256,256], index: 0, kind: input, shape index: {}]   ;;  %s1921_s2 = inlined_call_operand.vmem [shape: bf16[128,128], index: 2, kind: input, shape index: {}]   ;;  %s1922_s3 = inlined_call_operand.vmem [shape: f32[1,128], index: 3, kind: input, shape index: {}]   ;;  %s1923_s4 = inlined_call_operand.vmem [shape: bf16[256,128], index: 4, kind: output, shape index: {}]  }
   0x1   :  { %v1533_v0 = vld [vmem:[%s1919_s1 + $0x40] sm:$0xff]   ;;  %v1535_v2 = vld [vmem:[%s1919_s1 + $0x48] sm:$0xff]   ;;  %v1537_v4 = vld [vmem:[%s1919_s1 + $0x50] sm:$0xff]  }
   0x2   :  { %v1534_v1 = vld [vmem:[%s1919_s1] sm:$0xff]   ;;  %1333 = vmatprep.subr.bf16.mxu0 %v1533_v0  ;;  %1517 = vmatprep.subr.bf16.mxu1 %v1533_v0  ;;  %v1536_v3 = vld [vmem:[%s1919_s1 + $0x8] sm:$0xff]   ;;  %v1538_v5 = vld [vmem:[%s1919_s1 + $0x10] sm:$0xff]  }
   0x3   :  { %1334 = vmatpush3.bf16.msra.mxu0 %v1534_v1  ;;  %1525 = vmatpush3.bf16.msra.mxu1 %v1534_v1  ;;  %v1539_v6 = vld [vmem:[%s1919_s1 + $0x58] sm:$0xff]   ;;  %v1541_v8 = vld [vmem:[%s1919_s1 + $0x60] sm:$0xff]   ;;  %v1543_v10 = vld [vmem:[%s1919_s1 + $0x68] sm:$0xff]  }
   0x4   :  { %1335 = vmatprep.subr.bf16.mxu0 %v1535_v2  ;;  %1518 = vmatprep.subr.bf16.mxu1 %v1535_v2  ;;  %v1540_v7 = vld [vmem:[%s1919_s1 + $0x18] sm:$0xff]   ;;  %v1542_v9 = vld [vmem:[%s1919_s1 + $0x20] sm:$0xff]   ;;  %v1544_v12 = vld [vmem:[%s1919_s1 + $0x28] sm:$0xff]  }
   0x5   :  { %v1551_v11 = vld [vmem:[%s1920_s0 + $0x4] ss:$8 sps:$4 sm:$0xff]   ;;  %v1545_v13 = vld [vmem:[%s1919_s1 + $0x70] sm:$0xff]   ;;  %v1547_v15 = vld [vmem:[%s1919_s1 + $0x78] sm:$0xff]  }
   0x6   :  { %443 = vmatprep.mubr.bf16.mxu0 %v1551_v11  ;;  %v1546_v14 = vld [vmem:[%s1919_s1 + $0x30] sm:$0xff]   ;;  %v1548_v16 = vld [vmem:[%s1919_s1 + $0x38] sm:$0xff]   ;;  %v1549_v17 = vld [vmem:[%s1920_s0] ss:$8 sps:$4 sm:$0xff]  }
   0x7   :  { %1336 = vmatpush3.bf16.msra.mxu0 %v1536_v3  ;;  %1526 = vmatpush3.bf16.msra.mxu1 %v1536_v3  ;;  %v1581_v18 = vld [vmem:[%s1920_s0 + $0xc4] ss:$8 sps:$4 sm:$0xff]   ;;  %v1552_v19 = vld [vmem:[%s1920_s0 + $0x14] ss:$8 sps:$4 sm:$0xff]   ;;  %v1579_v20 = vld [vmem:[%s1920_s0 + $0xc0] ss:$8 sps:$4 sm:$0xff]  }
   0x8   :  { %1337 = vmatprep.subr.bf16.mxu0 %v1537_v4  ;;  %1519 = vmatprep.subr.bf16.mxu1 %v1537_v4  ;;  %v1585_v21 = vld [vmem:[%s1920_s0 + $0xd4] ss:$8 sps:$4 sm:$0xff]   ;;  %v1554_v22 = vld [vmem:[%s1920_s0 + $0x10] ss:$8 sps:$4 sm:$0xff]   ;;  %v1555_v23 = vld [vmem:[%s1920_s0 + $0x24] ss:$8 sps:$4 sm:$0xff]  }
   0x9   :  { %539 = vmatprep.mubr.bf16.mxu1 %v1581_v18  ;;  %v1587_v24 = vld [vmem:[%s1920_s0 + $0xd0] ss:$8 sps:$4 sm:$0xff]   ;;  %v1597_v25 = vld [vmem:[%s1921_s2] sm:$0xff]   ;;  %v1598_v26 = vld [vmem:[%s1921_s2 + $0x8] sm:$0xff]  }
   0xa   :  { %v1591_v27 = vld [vmem:[%s1920_s0 + $0xe4] ss:$8 sps:$4 sm:$0xff]   ;;  %v1599_v28 = vld [vmem:[%s1921_s2 + $0x10] sm:$0xff]   ;;  %v1557_v29 = vld [vmem:[%s1920_s0 + $0x20] ss:$8 sps:$4 sm:$0xff]  }
   0xb   :  { %1338 = vmatpush3.bf16.msra.mxu0 %v1538_v5  ;;  %1527 = vmatpush3.bf16.msra.mxu1 %v1538_v5  ;;  %v1600_v30 = vld [vmem:[%s1921_s2 + $0x18] sm:$0xff]   ;;  %v1593_v32 = vld [vmem:[%s1920_s0 + $0xe0] ss:$8 sps:$4 sm:$0xff]   ;;  %v1561_v35 = vld [vmem:[%s1920_s0 + $0x44] ss:$8 sps:$4 sm:$0xff]  }
   0xc   :  { %1339 = vmatprep.subr.bf16.mxu0 %v1539_v6  ;;  %1520 = vmatprep.subr.bf16.mxu1 %v1539_v6  ;;  %v1558_v31 = vld [vmem:[%s1920_s0 + $0x34] ss:$8 sps:$4 sm:$0xff]   ;;  %v1560_v34 = vld [vmem:[%s1920_s0 + $0x30] ss:$8 sps:$4 sm:$0xff]   ;;  %v1563_v37 = vld [vmem:[%s1920_s0 + $0x40] ss:$8 sps:$4 sm:$0xff]  }
   0xd   :  { %v1594_v33 = vld [vmem:[%s1920_s0 + $0xf4] ss:$8 sps:$4 sm:$0xff]   ;;  %v1596_v36 = vld [vmem:[%s1920_s0 + $0xf0] ss:$8 sps:$4 sm:$0xff]   ;;  %v1567_v40 = vld [vmem:[%s1920_s0 + $0x64] ss:$8 sps:$4 sm:$0xff]  }
   0xe   :  { %v1564_v38 = vld [vmem:[%s1920_s0 + $0x54] ss:$8 sps:$4 sm:$0xff]   ;;  %v1566_v39 = vld [vmem:[%s1920_s0 + $0x50] ss:$8 sps:$4 sm:$0xff]   ;;  %v1569_v41 = vld [vmem:[%s1920_s0 + $0x60] ss:$8 sps:$4 sm:$0xff]  }
   0xf   :  { %1340 = vmatpush3.bf16.msra.mxu0 %v1540_v7  ;;  %1528 = vmatpush3.bf16.msra.mxu1 %v1540_v7  ;;  %v1570_v42 = vld [vmem:[%s1920_s0 + $0x74] ss:$8 sps:$4 sm:$0xff]   ;;  %v1572_v43 = vld [vmem:[%s1920_s0 + $0x70] ss:$8 sps:$4 sm:$0xff]   ;;  %v1573_v44 = vld [vmem:[%s1920_s0 + $0x84] ss:$8 sps:$4 sm:$0xff]  }
  0x10   :  { %1341 = vmatprep.subr.bf16.mxu0 %v1541_v8  ;;  %1521 = vmatprep.subr.bf16.mxu1 %v1541_v8  ;;  %v1575_v45 = vld [vmem:[%s1920_s0 + $0x80] ss:$8 sps:$4 sm:$0xff]   ;;  %v1576_v46 = vld [vmem:[%s1920_s0 + $0x94] ss:$8 sps:$4 sm:$0xff]   ;;  %v1578_v47 = vld [vmem:[%s1920_s0 + $0x90] ss:$8 sps:$4 sm:$0xff]  }
  0x11   :  { %v1582_v48 = vld [vmem:[%s1920_s0 + $0xa4] ss:$8 sps:$4 sm:$0xff]   ;;  %v1584_v49 = vld [vmem:[%s1920_s0 + $0xa0] ss:$8 sps:$4 sm:$0xff]   ;;  %v1588_v50 = vld [vmem:[%s1920_s0 + $0xb4] ss:$8 sps:$4 sm:$0xff]  }
  0x12   :  { %v1601_v51 = vld [vmem:[%s1921_s2 + $0x20] sm:$0xff]   ;;  %v1590_v52 = vld [vmem:[%s1920_s0 + $0xb0] ss:$8 sps:$4 sm:$0xff]   ;;  %v1602_v53 = vld [vmem:[%s1921_s2 + $0x28] sm:$0xff]  }
  0x13   :  { %1342 = vmatpush3.bf16.msra.mxu0 %v1542_v9  ;;  %1529 = vmatpush3.bf16.msra.mxu1 %v1542_v9  ;;  %v1603_v54 = vld [vmem:[%s1921_s2 + $0x30] sm:$0xff]   ;;  %v1604_v55 = vld [vmem:[%s1921_s2 + $0x38] sm:$0xff]  }
  0x14   :  { %1343 = vmatprep.subr.bf16.mxu0 %v1543_v10  ;;  %1522 = vmatprep.subr.bf16.mxu1 %v1543_v10 }
  0x17   :  { %1344 = vmatpush3.bf16.msra.mxu0 %v1544_v12  ;;  %1530 = vmatpush3.bf16.msra.mxu1 %v1544_v12 }
  0x18   :  { %1345 = vmatprep.subr.bf16.mxu0 %v1545_v13  ;;  %1523 = vmatprep.subr.bf16.mxu1 %v1545_v13 }
  0x1b   :  { %1346 = vmatpush3.bf16.msra.mxu0 %v1546_v14  ;;  %1531 = vmatpush3.bf16.msra.mxu1 %v1546_v14 }
  0x1c   :  { %1347 = vmatprep.subr.bf16.mxu0 %v1547_v15  ;;  %1524 = vmatprep.subr.bf16.mxu1 %v1547_v15 }
  0x1f   :  { %1348 = vmatpush3.bf16.msra.mxu0 %v1548_v16  ;;  %1532 = vmatpush3.bf16.msra.mxu1 %v1548_v16 }
  0x20   :  { %1469 = vmatprep.subr.bf16.mxu1 %v1597_v25 }
  0x22   :  { %444 = vmatmul.mubr.bf16.vlgmr.msra.gmra.mrb[0].mxu0 %v1549_v17  ;;  %540 = vmatmul.mubr.bf16.vlgmr.msra.gmra.mrb[0].mxu1 %v1579_v20 }
  0x23   :  { %451 = vmatprep.mubr.bf16.mxu0 %v1552_v19  ;;  %547 = vmatprep.mubr.bf16.mxu1 %v1585_v21 }
  0x24   :  { %1470 = vmatpush3.bf16.msra.mxu1 %v1597_v25 }
  0x25   :  { %1471 = vmatprep.subr.bf16.mxu1 %v1598_v26 }
  0x28   :  { %1472 = vmatpush3.bf16.msra.mxu1 %v1598_v26 }
  0x29   :  { %1473 = vmatprep.subr.bf16.mxu1 %v1599_v28 }
  0x2a   :  { %452 = vmatmul.mubr.bf16.gmra.mrb[4].mxu0 %v1554_v22  ;;  %548 = vmatmul.mubr.bf16.gmra.mrb[4].mxu1 %v1587_v24 }
  0x2b   :  { %459 = vmatprep.mubr.bf16.mxu0 %v1555_v23  ;;  %555 = vmatprep.mubr.bf16.mxu1 %v1591_v27 }
  0x2c   :  { %1474 = vmatpush3.bf16.msra.mxu1 %v1599_v28 }
  0x2d   :  { %1475 = vmatprep.subr.bf16.mxu1 %v1600_v30 }
  0x30   :  { %1476 = vmatpush3.bf16.msra.mxu1 %v1600_v30 }
  0x31   :  { %1477 = vmatprep.subr.bf16.mxu1 %v1601_v51 }
  0x32   :  { %460 = vmatmul.mubr.bf16.gmra.mrb[8].mxu0 %v1557_v29  ;;  %556 = vmatmul.mubr.bf16.gmra.mrb[8].mxu1 %v1593_v32 }
  0x33   :  { %467 = vmatprep.mubr.bf16.mxu0 %v1558_v31  ;;  %563 = vmatprep.mubr.bf16.mxu1 %v1594_v33 }
  0x34   :  { %1478 = vmatpush3.bf16.msra.mxu1 %v1601_v51 }
  0x35   :  { %1479 = vmatprep.subr.bf16.mxu1 %v1602_v53 }
  0x38   :  { %1480 = vmatpush3.bf16.msra.mxu1 %v1602_v53 }
  0x39   :  { %1481 = vmatprep.subr.bf16.mxu1 %v1603_v54 }
  0x3a   :  { %468 = vmatmul.mubr.bf16.gmra.mrb[12].mxu0 %v1560_v34  ;;  %564 = vmatmul.mubr.bf16.gmra.mrb[12].mxu1 %v1596_v36 }
  0x3b   :  { %475 = vmatprep.mubr.bf16.mxu0 %v1561_v35 }
  0x3c   :  { %1482 = vmatpush3.bf16.msra.mxu1 %v1603_v54 }
  0x3d   :  { %1483 = vmatprep.subr.bf16.mxu1 %v1604_v55 }
  0x40   :  { %1484 = vmatpush3.bf16.msra.mxu1 %v1604_v55 }
  0x42   :  { %476 = vmatmul.mubr.bf16.gmra.mrb[16].mxu0 %v1563_v37 }
  0x43   :  { %483 = vmatprep.mubr.bf16.mxu0 %v1564_v38 }
  0x4a   :  { %484 = vmatmul.mubr.bf16.gmra.mrb[20].mxu0 %v1566_v39 }
  0x4b   :  { %491 = vmatprep.mubr.bf16.mxu0 %v1567_v40 }
  0x52   :  { %492 = vmatmul.mubr.bf16.gmra.mrb[24].mxu0 %v1569_v41 }
  0x53   :  { %499 = vmatprep.mubr.bf16.mxu0 %v1570_v42 }
  0x5a   :  { %500 = vmatmul.mubr.bf16.gmra.mrb[28].mxu0 %v1572_v43 }
  0x5b   :  { %507 = vmatprep.mubr.bf16.mxu0 %v1573_v44 }
  0x62   :  { %508 = vmatmul.mubr.bf16.gmra.mrb[32].mxu0 %v1575_v45 }
  0x63   :  { %515 = vmatprep.mubr.bf16.mxu0 %v1576_v46 }
  0x6a   :  { %516 = vmatmul.mubr.bf16.gmra.mrb[36].mxu0 %v1578_v47 }
  0x6b   :  { %523 = vmatprep.mubr.bf16.mxu0 %v1582_v48 }
  0x72   :  { %524 = vmatmul.mubr.bf16.gmra.mrb[40].mxu0 %v1584_v49 }
  0x73   :  { %531 = vmatprep.mubr.bf16.mxu0 %v1588_v50 }
  0x7a   :  { %532 = vmatmul.mubr.bf16.gmra.mrb[44].mxu0 %v1590_v52 }
  0xf5   :  { %v1349_v56 = vpop.f32.mrb[0].mxu0  ;;  %v1421_v58 = vpop.f32.mrb[0].mxu1 }
  0xf6   :  { %v1350_v57 = vpop.f32.mrb[1].mxu0  ;;  %v1422_v61 = vpop.f32.mrb[1].mxu1 }
  0xf7   :  { %v1351_v59 = vadd.f32 %v1350_v57, %v1349_v56  ;;  %v1352_v60 = vpop.f32.mrb[2].mxu0  ;;  %v1798_v63 = vadd.f32 %v1422_v61, %v1421_v58  ;;  %v1424_v0 = vpop.f32.mrb[2].mxu1 }
  0xf8   :  { %v1353_v62 = vpop.f32.mrb[3].mxu0  ;;  %v1425_v2 = vpop.f32.mrb[3].mxu1 }
  0xf9   :  { %v1354_v1 = vadd.f32 %v1353_v62, %v1352_v60  ;;  %v1800_v3 = vadd.f32 %v1425_v2, %v1424_v0 }
  0xfb   :  { %v671_v4 = vpack.c.bf16 %v1354_v1, %v1351_v59  ;;  %v683_v5 = vpack.c.bf16 %v1800_v3, %v1798_v63 }
  0xfd   :  { %v1355_v6 = vpop.f32.mrb[4].mxu0  ;;  %1485 = vmatprep.mubr.bf16.mxu1 %v671_v4  ;;  %v1427_v8 = vpop.f32.mrb[4].mxu1 }
  0xfe   :  { %v1356_v7 = vpop.f32.mrb[5].mxu0  ;;  %v1428_v11 = vpop.f32.mrb[5].mxu1 }
  0xff   :  { %v1357_v9 = vadd.f32 %v1356_v7, %v1355_v6  ;;  %v1358_v10 = vpop.f32.mrb[6].mxu0  ;;  %v1804_v13 = vadd.f32 %v1428_v11, %v1427_v8  ;;  %v1430_v14 = vpop.f32.mrb[6].mxu1 }
 0x100   :  { %v1359_v12 = vpop.f32.mrb[7].mxu0  ;;  %v1431_v16 = vpop.f32.mrb[7].mxu1 }
 0x101   :  { %v1360_v15 = vadd.f32 %v1359_v12, %v1358_v10  ;;  %v1806_v17 = vadd.f32 %v1431_v16, %v1430_v14 }
 0x103   :  { %v672_v18 = vpack.c.bf16 %v1360_v15, %v1357_v9  ;;  %v684_v19 = vpack.c.bf16 %v1806_v17, %v1804_v13 }
 0x105   :  { %v1361_v20 = vpop.f32.mrb[8].mxu0  ;;  %1486 = vmatmul.mubr.bf16.vlgmr.msra.gmra.mrb[16].mxu1 %v672_v18  ;;  %v1433_v22 = vpop.f32.mrb[8].mxu1 }
 0x106   :  { %v1362_v21 = vpop.f32.mrb[9].mxu0  ;;  %v1434_v25 = vpop.f32.mrb[9].mxu1 }
 0x107   :  { %v1363_v23 = vadd.f32 %v1362_v21, %v1361_v20  ;;  %v1364_v24 = vpop.f32.mrb[10].mxu0  ;;  %v1810_v27 = vadd.f32 %v1434_v25, %v1433_v22  ;;  %v1436_v28 = vpop.f32.mrb[10].mxu1 }
 0x108   :  { %v1365_v26 = vpop.f32.mrb[11].mxu0  ;;  %v1437_v30 = vpop.f32.mrb[11].mxu1 }
 0x109   :  { %v1366_v29 = vadd.f32 %v1365_v26, %v1364_v24  ;;  %v1812_v31 = vadd.f32 %v1437_v30, %v1436_v28 }
 0x10b   :  { %v673_v32 = vpack.c.bf16 %v1366_v29, %v1363_v23  ;;  %v685_v33 = vpack.c.bf16 %v1812_v31, %v1810_v27 }
 0x10d   :  { %v1367_v34 = vpop.f32.mrb[12].mxu0  ;;  %1489 = vmatprep.mubr.bf16.mxu1 %v673_v32  ;;  %v1439_v36 = vpop.f32.mrb[12].mxu1 }
 0x10e   :  { %v1368_v35 = vpop.f32.mrb[13].mxu0  ;;  %v1440_v39 = vpop.f32.mrb[13].mxu1 }
 0x10f   :  { %v1369_v37 = vadd.f32 %v1368_v35, %v1367_v34  ;;  %v1370_v38 = vpop.f32.mrb[14].mxu0  ;;  %v1816_v41 = vadd.f32 %v1440_v39, %v1439_v36  ;;  %v1442_v42 = vpop.f32.mrb[14].mxu1 }
 0x110   :  { %v1371_v40 = vpop.f32.mrb[15].mxu0  ;;  %v1443_v44 = vpop.f32.mrb[15].mxu1 }
 0x111   :  { %v1372_v43 = vadd.f32 %v1371_v40, %v1370_v38  ;;  %v1818_v45 = vadd.f32 %v1443_v44, %v1442_v42 }
 0x113   :  { %v674_v46 = vpack.c.bf16 %v1372_v43, %v1369_v37  ;;  %v686_v47 = vpack.c.bf16 %v1818_v45, %v1816_v41 }
 0x115   :  { %v1373_v48 = vpop.f32.mrb[16].mxu0  ;;  %1490 = vmatmul.mubr.bf16.gmra.mrb[20].mxu1 %v674_v46 }
 0x116   :  { %v1374_v49 = vpop.f32.mrb[17].mxu0 }
 0x117   :  { %v1375_v50 = vadd.f32 %v1374_v49, %v1373_v48  ;;  %v1376_v51 = vpop.f32.mrb[18].mxu0 }
 0x118   :  { %v1377_v52 = vpop.f32.mrb[19].mxu0 }
 0x119   :  { %v1378_v53 = vadd.f32 %v1377_v52, %v1376_v51  ;;  %v1837_v52 = vld [vmem:[%s1922_s3] ss:$0 sm:$0xff] }
 0x11b   :  { %v675_v54 = vpack.c.bf16 %v1378_v53, %v1375_v50 }
 0x11d   :  { %v1379_v55 = vpop.f32.mrb[20].mxu0  ;;  %1493 = vmatprep.mubr.bf16.mxu1 %v675_v54 }
 0x11e   :  { %v1380_v56 = vpop.f32.mrb[21].mxu0 }
 0x11f   :  { %v1381_v57 = vadd.f32 %v1380_v56, %v1379_v55  ;;  %v1382_v58 = vpop.f32.mrb[22].mxu0 }
 0x120   :  { %v1383_v59 = vpop.f32.mrb[23].mxu0 }
 0x121   :  { %v1384_v60 = vadd.f32 %v1383_v59, %v1382_v58 }
 0x123   :  { %v676_v61 = vpack.c.bf16 %v1384_v60, %v1381_v57 }
 0x125   :  { %v1385_v62 = vpop.f32.mrb[24].mxu0  ;;  %1494 = vmatmul.mubr.bf16.gmra.mrb[24].mxu1 %v676_v61 }
 0x126   :  { %v1386_v0 = vpop.f32.mrb[25].mxu0 }
 0x127   :  { %v1387_v1 = vadd.f32 %v1386_v0, %v1385_v62  ;;  %v1388_v2 = vpop.f32.mrb[26].mxu0 }
 0x128   :  { %v1389_v4 = vpop.f32.mrb[27].mxu0 }
 0x129   :  { %v1390_v6 = vadd.f32 %v1389_v4, %v1388_v2 }
 0x12b   :  { %v677_v7 = vpack.c.bf16 %v1390_v6, %v1387_v1 }
 0x12d   :  { %v1391_v8 = vpop.f32.mrb[28].mxu0  ;;  %1497 = vmatprep.mubr.bf16.mxu1 %v677_v7 }
 0x12e   :  { %v1392_v9 = vpop.f32.mrb[29].mxu0 }
 0x12f   :  { %v1393_v10 = vadd.f32 %v1392_v9, %v1391_v8  ;;  %v1394_v11 = vpop.f32.mrb[30].mxu0 }
 0x130   :  { %v1395_v12 = vpop.f32.mrb[31].mxu0 }
 0x131   :  { %v1396_v14 = vadd.f32 %v1395_v12, %v1394_v11 }
 0x133   :  { %v678_v15 = vpack.c.bf16 %v1396_v14, %v1393_v10 }
 0x135   :  { %v1397_v16 = vpop.f32.mrb[32].mxu0  ;;  %1498 = vmatmul.mubr.bf16.gmra.mrb[28].mxu1 %v678_v15 }
 0x136   :  { %v1398_v18 = vpop.f32.mrb[33].mxu0 }
 0x137   :  { %v1399_v20 = vadd.f32 %v1398_v18, %v1397_v16  ;;  %v1400_v21 = vpop.f32.mrb[34].mxu0 }
 0x138   :  { %v1401_v22 = vpop.f32.mrb[35].mxu0 }
 0x139   :  { %v1402_v23 = vadd.f32 %v1401_v22, %v1400_v21 }
 0x13b   :  { %v679_v24 = vpack.c.bf16 %v1402_v23, %v1399_v20 }
 0x13d   :  { %v1403_v25 = vpop.f32.mrb[36].mxu0  ;;  %1501 = vmatprep.mubr.bf16.mxu1 %v679_v24 }
 0x13e   :  { %v1404_v26 = vpop.f32.mrb[37].mxu0 }
 0x13f   :  { %v1405_v28 = vadd.f32 %v1404_v26, %v1403_v25  ;;  %v1406_v29 = vpop.f32.mrb[38].mxu0 }
 0x140   :  { %v1407_v30 = vpop.f32.mrb[39].mxu0 }
 0x141   :  { %v1408_v32 = vadd.f32 %v1407_v30, %v1406_v29 }
 0x143   :  { %v680_v34 = vpack.c.bf16 %v1408_v32, %v1405_v28 }
 0x145   :  { %v1409_v35 = vpop.f32.mrb[40].mxu0  ;;  %1502 = vmatmul.mubr.bf16.gmra.mrb[32].mxu1 %v680_v34 }
 0x146   :  { %v1410_v36 = vpop.f32.mrb[41].mxu0 }
 0x147   :  { %v1411_v37 = vadd.f32 %v1410_v36, %v1409_v35  ;;  %v1412_v38 = vpop.f32.mrb[42].mxu0 }
 0x148   :  { %v1413_v39 = vpop.f32.mrb[43].mxu0 }
 0x149   :  { %v1414_v40 = vadd.f32 %v1413_v39, %v1412_v38 }
 0x14b   :  { %v681_v42 = vpack.c.bf16 %v1414_v40, %v1411_v37 }
 0x14d   :  { %v1415_v43 = vpop.f32.mrb[44].mxu0  ;;  %1505 = vmatprep.mubr.bf16.mxu1 %v681_v42 }
 0x14e   :  { %v1416_v44 = vpop.f32.mrb[45].mxu0 }
 0x14f   :  { %v1417_v46 = vadd.f32 %v1416_v44, %v1415_v43  ;;  %v1418_v48 = vpop.f32.mrb[46].mxu0 }
 0x150   :  { %v1419_v49 = vpop.f32.mrb[47].mxu0 }
 0x151   :  { %v1420_v50 = vadd.f32 %v1419_v49, %v1418_v48 }
 0x153   :  { %v682_v51 = vpack.c.bf16 %v1420_v50, %v1417_v46 }
 0x155   :  { %1506 = vmatmul.mubr.bf16.gmra.mrb[36].mxu1 %v682_v51 }
 0x156   :  { %1509 = vmatprep.mubr.bf16.mxu1 %v683_v5 }
 0x15d   :  { %1510 = vmatmul.mubr.bf16.gmra.mrb[40].mxu1 %v684_v19 }
 0x15e   :  { %1513 = vmatprep.mubr.bf16.mxu1 %v685_v33 }
 0x165   :  { %1514 = vmatmul.mubr.bf16.gmra.mrb[44].mxu1 %v686_v47 }
 0x1d8   :  { %v1487_v53 = vpop.f32.mrb[16].mxu1 }
 0x1d9   :  { %v801_v63 = vadd.f32 %v1487_v53, %v1837_v52  ;;  %v792_v3 = vpop.f32.mrb[17].mxu1 }
 0x1da   :  { %v793_v5 = vadd.f32 %v1837_v52, %v792_v3  ;;  %v1488_v13 = vpop.f32.mrb[18].mxu1 }
 0x1db   :  { %v804_v17 = vadd.f32 %v1488_v13, %v1837_v52  ;;  %v795_v19 = vpop.f32.mrb[19].mxu1  ;;  %v921_v31 = vmax.f32 %v801_v63, 0.0 }
 0x1dc   :  { %v796_v27 = vadd.f32 %v1837_v52, %v795_v19  ;;  %v919_v41 = vmax.f32 %v793_v5, 0.0 }
 0x1dd   :  { %v922_v33 = vmax.f32 %v804_v17, 0.0 }
 0x1de   :  { %v920_v45 = vmax.f32 %v796_v27, 0.0 }
 0x1df   :  { %v1246_v47 = vpack.c.bf16 %v922_v33, %v921_v31 }
 0x1e0   :  { %v1241_v54 = vpack.c.bf16 %v920_v45, %v919_v41 }
 0x1e1   :  { %1318 = vst [vmem:[%s1923_s4 + $0x8] sm:$0xff] %v1246_v47  }
 0x1e2   :  { %1242 = vst [vmem:[%s1923_s4] sm:$0xff] %v1241_v54  }
 0x1e8   :  { %v1491_v55 = vpop.f32.mrb[20].mxu1 }
 0x1e9   :  { %v817_v56 = vadd.f32 %v1491_v55, %v1837_v52  ;;  %v808_v57 = vpop.f32.mrb[21].mxu1 }
 0x1ea   :  { %v809_v58 = vadd.f32 %v1837_v52, %v808_v57  ;;  %v1492_v59 = vpop.f32.mrb[22].mxu1 }
 0x1eb   :  { %v820_v60 = vadd.f32 %v1492_v59, %v1837_v52  ;;  %v811_v61 = vpop.f32.mrb[23].mxu1  ;;  %v925_v0 = vmax.f32 %v817_v56, 0.0 }
 0x1ec   :  { %v812_v62 = vadd.f32 %v1837_v52, %v811_v61  ;;  %v923_v2 = vmax.f32 %v809_v58, 0.0 }
 0x1ed   :  { %v926_v1 = vmax.f32 %v820_v60, 0.0 }
 0x1ee   :  { %v924_v4 = vmax.f32 %v812_v62, 0.0 }
 0x1ef   :  { %v1256_v6 = vpack.c.bf16 %v926_v1, %v925_v0 }
 0x1f0   :  { %v1251_v7 = vpack.c.bf16 %v924_v4, %v923_v2 }
 0x1f1   :  { %1320 = vst [vmem:[%s1923_s4 + $0x18] sm:$0xff] %v1256_v6  }
 0x1f2   :  { %1319 = vst [vmem:[%s1923_s4 + $0x10] sm:$0xff] %v1251_v7  }
 0x1f8   :  { %v1495_v8 = vpop.f32.mrb[24].mxu1 }
 0x1f9   :  { %v833_v9 = vadd.f32 %v1495_v8, %v1837_v52  ;;  %v824_v10 = vpop.f32.mrb[25].mxu1 }
 0x1fa   :  { %v825_v11 = vadd.f32 %v1837_v52, %v824_v10  ;;  %v1496_v12 = vpop.f32.mrb[26].mxu1 }
 0x1fb   :  { %v836_v14 = vadd.f32 %v1496_v12, %v1837_v52  ;;  %v827_v15 = vpop.f32.mrb[27].mxu1  ;;  %v929_v18 = vmax.f32 %v833_v9, 0.0 }
 0x1fc   :  { %v828_v16 = vadd.f32 %v1837_v52, %v827_v15  ;;  %v927_v21 = vmax.f32 %v825_v11, 0.0 }
 0x1fd   :  { %v930_v20 = vmax.f32 %v836_v14, 0.0 }
 0x1fe   :  { %v928_v22 = vmax.f32 %v828_v16, 0.0 }
 0x1ff   :  { %v1266_v23 = vpack.c.bf16 %v930_v20, %v929_v18 }
 0x200   :  { %v1261_v24 = vpack.c.bf16 %v928_v22, %v927_v21 }
 0x201   :  { %1322 = vst [vmem:[%s1923_s4 + $0x28] sm:$0xff] %v1266_v23  }
 0x202   :  { %1321 = vst [vmem:[%s1923_s4 + $0x20] sm:$0xff] %v1261_v24  }
 0x208   :  { %v1499_v25 = vpop.f32.mrb[28].mxu1 }
 0x209   :  { %v849_v26 = vadd.f32 %v1499_v25, %v1837_v52  ;;  %v840_v28 = vpop.f32.mrb[29].mxu1 }
 0x20a   :  { %v841_v29 = vadd.f32 %v1837_v52, %v840_v28  ;;  %v1500_v30 = vpop.f32.mrb[30].mxu1 }
 0x20b   :  { %v852_v32 = vadd.f32 %v1500_v30, %v1837_v52  ;;  %v843_v34 = vpop.f32.mrb[31].mxu1  ;;  %v933_v36 = vmax.f32 %v849_v26, 0.0 }
 0x20c   :  { %v844_v35 = vadd.f32 %v1837_v52, %v843_v34  ;;  %v931_v38 = vmax.f32 %v841_v29, 0.0 }
 0x20d   :  { %v934_v37 = vmax.f32 %v852_v32, 0.0 }
 0x20e   :  { %v932_v39 = vmax.f32 %v844_v35, 0.0 }
 0x20f   :  { %v1276_v40 = vpack.c.bf16 %v934_v37, %v933_v36 }
 0x210   :  { %v1271_v42 = vpack.c.bf16 %v932_v39, %v931_v38 }
 0x211   :  { %1324 = vst [vmem:[%s1923_s4 + $0x38] sm:$0xff] %v1276_v40  }
 0x212   :  { %1323 = vst [vmem:[%s1923_s4 + $0x30] sm:$0xff] %v1271_v42  }
 0x218   :  { %v1503_v43 = vpop.f32.mrb[32].mxu1 }
 0x219   :  { %v865_v44 = vadd.f32 %v1503_v43, %v1837_v52  ;;  %v856_v46 = vpop.f32.mrb[33].mxu1 }
 0x21a   :  { %v857_v48 = vadd.f32 %v1837_v52, %v856_v46  ;;  %v1504_v49 = vpop.f32.mrb[34].mxu1 }
 0x21b   :  { %v868_v50 = vadd.f32 %v1504_v49, %v1837_v52  ;;  %v859_v51 = vpop.f32.mrb[35].mxu1  ;;  %v937_v63 = vmax.f32 %v865_v44, 0.0 }
 0x21c   :  { %v860_v53 = vadd.f32 %v1837_v52, %v859_v51  ;;  %v935_v5 = vmax.f32 %v857_v48, 0.0 }
 0x21d   :  { %v938_v3 = vmax.f32 %v868_v50, 0.0 }
 0x21e   :  { %v936_v13 = vmax.f32 %v860_v53, 0.0 }
 0x21f   :  { %v1286_v17 = vpack.c.bf16 %v938_v3, %v937_v63 }
 0x220   :  { %v1281_v19 = vpack.c.bf16 %v936_v13, %v935_v5 }
 0x221   :  { %1326 = vst [vmem:[%s1923_s4 + $0x48] sm:$0xff] %v1286_v17  }
 0x222   :  { %1325 = vst [vmem:[%s1923_s4 + $0x40] sm:$0xff] %v1281_v19  }
 0x228   :  { %v1507_v27 = vpop.f32.mrb[36].mxu1 }
 0x229   :  { %v881_v31 = vadd.f32 %v1507_v27, %v1837_v52  ;;  %v872_v33 = vpop.f32.mrb[37].mxu1 }
 0x22a   :  { %v873_v41 = vadd.f32 %v1837_v52, %v872_v33  ;;  %v1508_v45 = vpop.f32.mrb[38].mxu1 }
 0x22b   :  { %v884_v47 = vadd.f32 %v1508_v45, %v1837_v52  ;;  %v875_v54 = vpop.f32.mrb[39].mxu1  ;;  %v941_v56 = vmax.f32 %v881_v31, 0.0 }
 0x22c   :  { %v876_v55 = vadd.f32 %v1837_v52, %v875_v54  ;;  %v939_v58 = vmax.f32 %v873_v41, 0.0 }
 0x22d   :  { %v942_v57 = vmax.f32 %v884_v47, 0.0 }
 0x22e   :  { %v940_v59 = vmax.f32 %v876_v55, 0.0 }
 0x22f   :  { %v1296_v60 = vpack.c.bf16 %v942_v57, %v941_v56 }
 0x230   :  { %v1291_v61 = vpack.c.bf16 %v940_v59, %v939_v58  ;;  %v1511_v62 = vpop.f32.mrb[40].mxu1 }
 0x231   :  { %1328 = vst [vmem:[%s1923_s4 + $0x58] sm:$0xff] %v1296_v60   ;;  %v897_v0 = vadd.f32 %v1511_v62, %v1837_v52  ;;  %v888_v1 = vpop.f32.mrb[41].mxu1 }
 0x232   :  { %1327 = vst [vmem:[%s1923_s4 + $0x50] sm:$0xff] %v1291_v61   ;;  %v889_v2 = vadd.f32 %v1837_v52, %v888_v1  ;;  %v1512_v4 = vpop.f32.mrb[42].mxu1 }
 0x233   :  { %v900_v6 = vadd.f32 %v1512_v4, %v1837_v52  ;;  %v891_v7 = vpop.f32.mrb[43].mxu1  ;;  %v945_v9 = vmax.f32 %v897_v0, 0.0 }
 0x234   :  { %v892_v8 = vadd.f32 %v1837_v52, %v891_v7  ;;  %v943_v11 = vmax.f32 %v889_v2, 0.0 }
 0x235   :  { %v946_v10 = vmax.f32 %v900_v6, 0.0 }
 0x236   :  { %v944_v12 = vmax.f32 %v892_v8, 0.0 }
 0x237   :  { %v1306_v14 = vpack.c.bf16 %v946_v10, %v945_v9 }
 0x238   :  { %v1301_v15 = vpack.c.bf16 %v944_v12, %v943_v11  ;;  %v1515_v16 = vpop.f32.mrb[44].mxu1 }
 0x239   :  { %1330 = vst [vmem:[%s1923_s4 + $0x68] sm:$0xff] %v1306_v14   ;;  %v913_v18 = vadd.f32 %v1515_v16, %v1837_v52  ;;  %v904_v20 = vpop.f32.mrb[45].mxu1 }
 0x23a   :  { %1329 = vst [vmem:[%s1923_s4 + $0x60] sm:$0xff] %v1301_v15   ;;  %v905_v21 = vadd.f32 %v1837_v52, %v904_v20  ;;  %v1516_v22 = vpop.f32.mrb[46].mxu1 }
 0x23b   :  { %v916_v23 = vadd.f32 %v1516_v22, %v1837_v52  ;;  %v907_v24 = vpop.f32.mrb[47].mxu1  ;;  %v949_v26 = vmax.f32 %v913_v18, 0.0 }
 0x23c   :  { %v908_v25 = vadd.f32 %v1837_v52, %v907_v24  ;;  %v947_v29 = vmax.f32 %v905_v21, 0.0 }
 0x23d   :  { %v950_v28 = vmax.f32 %v916_v23, 0.0 }
 0x23e   :  { %v948_v30 = vmax.f32 %v908_v25, 0.0 }
 0x23f   :  { %v1316_v32 = vpack.c.bf16 %v950_v28, %v949_v26 }
 0x240   :  { %v1311_v34 = vpack.c.bf16 %v948_v30, %v947_v29 }
 0x241   :  { %1332 = vst [vmem:[%s1923_s4 + $0x78] sm:$0xff] %v1316_v32  }
 0x242   :  { %1331 = vst [vmem:[%s1923_s4 + $0x70] sm:$0xff] %v1311_v34  }

</bundles_post_ra>
